<compile_context>
chip_gen: v7x
topology: tpu7x:2x2x1
jax: 0.10.0
libtpu: 0.0.40
codegen_flags: <defaults>
</compile_context>

<pallas_src>
import functools

import jax
import jax.numpy as jnp
from jax import lax
from jax.experimental import pallas as pl
from jax.experimental.pallas import tpu as pltpu

EPS = 1e-5
LANE = 128
VMEM_LIMIT = 32 * 1024 * 1024  # explicit scoped-VMEM budget (safe on v5e/v6e/v7x)


def _round_up(v, m):
    return ((v + m - 1) // m) * m


# ---------------------------------------------------------------- Pallas kernels

def conv3x3_stats_kernel(p_ref, w_ref, y_ref, st_ref):
    # p_ref : (1, 1, TR+2, Wh+2, Cin)  NHWC row panel with zero halo
    # w_ref : (3, 3, Cin, Cout_pad)
    # y_ref : (1, TR, Wh, Cout_pad)    conv output (pre-BN)
    # st_ref: (1, 1, 2, Cout_pad)      per-tile [sum, sum-of-squares]
    tr = y_ref.shape[1]
    wh = y_ref.shape[2]
    cin = p_ref.shape[-1]
    cp = y_ref.shape[-1]

    xt = p_ref[0, 0]                                   # (TR+2, Wh+2, Cin)
    acc = jnp.zeros((tr * wh, cp), jnp.float32)
    # 3x3 conv as 9 shifted matmuls on the MXU (im2col built implicitly,
    # per-tile, in VMEM; nothing materialized in HBM).
    for ky in range(3):
        for kx in range(3):
            patch = xt[ky:ky + tr, kx:kx + wh, :].reshape(tr * wh, cin)
            acc = acc + jnp.dot(patch, w_ref[ky, kx],
                                preferred_element_type=jnp.float32)

    y_ref[0] = acc.reshape(tr, wh, cp)

    s = jnp.sum(acc, axis=0, keepdims=True)            # (1, Cout_pad)
    ss = jnp.sum(acc * acc, axis=0, keepdims=True)     # (1, Cout_pad)
    st_ref[0, 0] = jnp.concatenate([s, ss], axis=0)    # (2, Cout_pad)


def bn_relu_kernel(y_ref, sc_ref, sh_ref, o_ref):
    # Fused BN finalize + ReLU: one FMA + max per element.
    cp = y_ref.shape[-1]
    sc = sc_ref[...].reshape(1, 1, cp)
    sh = sh_ref[...].reshape(1, 1, cp)
    o_ref[0] = jnp.maximum(y_ref[0] * sc + sh, 0.0)


# ---------------------------------------------------------------- pallas wrappers

def _conv3x3_stats(panels, w, hh, wh, tr):
    n, nrb, trp, wp, cin = panels.shape
    cp = w.shape[-1]
    return pl.pallas_call(
        conv3x3_stats_kernel,
        out_shape=(jax.ShapeDtypeStruct((n, hh, wh, cp), jnp.float32),
                   jax.ShapeDtypeStruct((n, nrb, 2, cp), jnp.float32)),
        grid=(n, nrb),
        in_specs=[
            pl.BlockSpec((1, 1, trp, wp, cin), lambda i, j: (i, j, 0, 0, 0)),
            pl.BlockSpec((3, 3, cin, cp), lambda i, j: (0, 0, 0, 0)),
        ],
        out_specs=(
            pl.BlockSpec((1, tr, wh, cp), lambda i, j: (i, j, 0, 0)),
            pl.BlockSpec((1, 1, 2, cp), lambda i, j: (i, j, 0, 0)),
        ),
        compiler_params=pltpu.CompilerParams(
            dimension_semantics=("parallel", "parallel"),
            vmem_limit_bytes=VMEM_LIMIT),
    )(panels, w)


def _bn_relu(y, scale, shift, tr):
    n, hh, wh, cp = y.shape
    nrb = hh // tr
    return pl.pallas_call(
        bn_relu_kernel,
        out_shape=jax.ShapeDtypeStruct((n, hh, wh, cp), jnp.float32),
        grid=(n, nrb),
        in_specs=[
            pl.BlockSpec((1, tr, wh, cp), lambda i, j: (i, j, 0, 0)),
            pl.BlockSpec((1, cp), lambda i, j: (0, 0)),
            pl.BlockSpec((1, cp), lambda i, j: (0, 0)),
        ],
        out_specs=pl.BlockSpec((1, tr, wh, cp), lambda i, j: (i, j, 0, 0)),
        compiler_params=pltpu.CompilerParams(
            dimension_semantics=("parallel", "parallel"),
            vmem_limit_bytes=VMEM_LIMIT),
    )(y, scale.reshape(1, cp), shift.reshape(1, cp))


# ---------------------------------------------------------------- glue (layout only)

def _halo_row_panels(a, tr):
    # a: (N, Hh, Wh, C) -> (N, NRB, TR+2, Wh+2, C): zero-pad H/W by 1 and cut
    # overlapping 3x3-halo row windows so each grid step's BlockSpec tile is a
    # plain non-overlapping block (Pallas then double-buffers the DMAs).
    n, hh, wh, c = a.shape
    ap = jnp.pad(a, ((0, 0), (1, 1), (1, 1), (0, 0)))
    nrb = hh // tr
    return jnp.stack([ap[:, rb * tr: rb * tr + tr + 2] for rb in range(nrb)],
                     axis=1)


def _prep_w(w, cin_pad, cout_pad):
    # PyTorch (Cout, Cin, 3, 3) -> (3, 3, Cin_pad, Cout_pad), zero-padded so the
    # output lane dim is a dense multiple of 128.
    cout, cin, _, _ = w.shape
    wt = jnp.transpose(w, (2, 3, 1, 0))
    return jnp.pad(wt, ((0, 0), (0, 0), (0, cin_pad - cin), (0, cout_pad - cout)))


def _bn_scale_shift(stats, gamma, beta, c, c_pad, m_total):
    # Reduce the tiny per-tile partials -> train-mode batch stats (biased var),
    # then fold gamma/beta/mean/var into one per-channel scale & shift.
    s = jnp.sum(stats[:, :, 0, :], axis=(0, 1))
    ss = jnp.sum(stats[:, :, 1, :], axis=(0, 1))
    mean = s / m_total
    var = jnp.maximum(ss / m_total - mean * mean, 0.0)
    g = jnp.pad(gamma, (0, c_pad - c))
    b = jnp.pad(beta, (0, c_pad - c))
    scale = g * lax.rsqrt(var + EPS)
    shift = b - mean * scale
    return scale, shift


# ---------------------------------------------------------------- forward

def down_forward(x, p, block_rows=None):
    # x: (N, Cin, H, W) -> (N, Cout, H/2, W/2)
    n, cin, h, w = x.shape
    assert h % 2 == 0 and w % 2 == 0
    hh, wh = h // 2, w // 2

    mid = p["w1"].shape[0]
    cout = p["w2"].shape[0]
    cmid_p = _round_up(mid, LANE)
    cout_p = _round_up(cout, LANE)

    if block_rows is None:
        # aim for roughly 512 output rows (TR * Wh) per tile
        target = max(1, 512 // max(wh, 1))
        block_rows = max(d for d in range(1, hh + 1)
                         if hh % d == 0 and d <= target)
    tr = block_rows
    assert hh % tr == 0

    # NCHW -> NHWC once at the API boundary (channels-last everywhere inside).
    xh = jnp.transpose(x, (0, 2, 3, 1))

    # 2x2 maxpool fused into conv1's input staging (single pass over x),
    # then halo row panels for the first conv.
    xp = xh.reshape(n, hh, 2, wh, 2, cin).max(axis=(2, 4))
    panels1 = _halo_row_panels(xp, tr)

    # --- conv1 + BN1(train) + ReLU  (bias is a no-op under train-mode BN)
    w1 = _prep_w(p["w1"], cin, cmid_p)
    y1, st1 = _conv3x3_stats(panels1, w1, hh, wh, tr)
    sc1, sh1 = _bn_scale_shift(st1, p["g1"], p["be1"], mid, cmid_p, n * hh * wh)
    a1 = _bn_relu(y1, sc1, sh1, tr)                 # (N, Hh, Wh, Cmid_pad)

    # --- conv2 + BN2(train) + ReLU (lane-dense padded channels feed straight in)
    panels2 = _halo_row_panels(a1, tr)
    w2 = _prep_w(p["w2"], cmid_p, cout_p)
    y2, st2 = _conv3x3_stats(panels2, w2, hh, wh, tr)
    sc2, sh2 = _bn_scale_shift(st2, p["g2"], p["be2"], cout, cout_p, n * hh * wh)
    a2 = _bn_relu(y2, sc2, sh2, tr)

    out = a2[..., :cout]                            # drop lane padding
    return jnp.transpose(out, (0, 3, 1, 2))         # back to NCHW


# ---------------------------------------------------------------- params / reference

def init_down_params(key, in_channels, out_channels):
    mid = out_channels  # DoubleConv default: mid_channels = out_channels
    k1, k2, k3, k4 = jax.random.split(key, 4)

    def conv_init(kw, kb, cin, cout):
        fan_in = cin * 9
        bound = 1.0 / jnp.sqrt(jnp.float32(fan_in))
        w = jax.random.uniform(kw, (cout, cin, 3, 3), jnp.float32, -bound, bound)
        b = jax.random.uniform(kb, (cout,), jnp.float32, -bound, bound)
        return w, b

    w1, b1 = conv_init(k1, k2, in_channels, mid)
    w2, b2 = conv_init(k3, k4, mid, out_channels)
    return dict(
        w1=w1, b1=b1, g1=jnp.ones((mid,), jnp.float32),
        be1=jnp.zeros((mid,), jnp.float32),
        w2=w2, b2=b2, g2=jnp.ones((out_channels,), jnp.float32),
        be2=jnp.zeros((out_channels,), jnp.float32),
    )


def ref_down(x, p):
    # Pure-JAX reference (includes the conv bias; train-mode BN makes it a no-op,
    # so the bias-free Pallas path must still match).
    n, c, h, w = x.shape
    xp = x.reshape(n, c, h // 2, 2, w // 2, 2).max(axis=(3, 5))

    def cbr(z, wgt, b, g, be):
        y = lax.conv_general_dilated(
            z, wgt, window_strides=(1, 1), padding=((1, 1), (1, 1)),
            dimension_numbers=("NCHW", "OIHW", "NCHW"))
        y = y + b[None, :, None, None]
        mean = y.mean(axis=(0, 2, 3), keepdims=True)
        var = jnp.square(y - mean).mean(axis=(0, 2, 3), keepdims=True)
        yh = (y - mean) * lax.rsqrt(var + EPS)
        return jnp.maximum(yh * g[None, :, None, None] + be[None, :, None, None], 0.0)

    xp = cbr(xp, p["w1"], p["b1"], p["g1"], p["be1"])
    return cbr(xp, p["w2"], p["b2"], p["g2"], p["be2"])


# ---------------------------------------------------------------- main

if __name__ == "__main__":
    key = jax.random.PRNGKey(0)
    kx, kp = jax.random.split(key)

    N, Cin, H, W = 2, 4, 16, 16
    Cout = 8

    x = jax.random.normal(kx, (N, Cin, H, W), jnp.float32)
    params = init_down_params(kp, Cin, Cout)

    fwd = jax.jit(functools.partial(down_forward, block_rows=4))  # 2 row tiles
    out = jax.block_until_ready(fwd(x, params))
    ref = jax.block_until_ready(ref_down(x, params))

    assert out.shape == (N, Cout, H // 2, W // 2), out.shape
    max_diff = float(jnp.max(jnp.abs(out - ref)))
    assert jnp.allclose(out, ref, atol=5e-4, rtol=5e-4), f"max abs diff {max_diff}"

    # TODO(synk): BatchNorm running-stat (momentum) buffers are a training
    # side-effect and are not materialized; the forward output does not depend
    # on them.
    print("KERNEL_OK")
</pallas_src>

<mosaic_0001>
module attributes {stable_mosaic.version = 11 : i64} {
  func.func @bn_relu_kernel(%arg0: i32, %arg1: i32, %arg2: memref<1x4x8x128xf32, #tpu.memory_space<vmem>>, %arg3: memref<1x128xf32, #tpu.memory_space<vmem>>, %arg4: memref<1x128xf32, #tpu.memory_space<vmem>>, %arg5: memref<1x4x8x128xf32, #tpu.memory_space<vmem>>) attributes {dimension_semantics = [#tpu.dimension_semantics<parallel>, #tpu.dimension_semantics<parallel>], iteration_bounds = array<i64: 2, 2>, scalar_prefetch = 0 : i64, scratch_operands = 0 : i64, tpu.core_type = #tpu.core_type<tc>, window_params = [{transform_indices = @transform_0, window_bounds = array<i64: 1, 4, 8, 128>}, {pipeline_mode = #tpu.pipeline_mode<synchronous>, transform_indices = @transform_1, window_bounds = array<i64: 1, 128>}, {pipeline_mode = #tpu.pipeline_mode<synchronous>, transform_indices = @transform_2, window_bounds = array<i64: 1, 128>}, {transform_indices = @transform_3, window_bounds = array<i64: 1, 4, 8, 128>}]} {
    %c0 = arith.constant 0 : index
    %c0_0 = arith.constant 0 : index
    %0 = vector.load %arg3[%c0, %c0_0] : memref<1x128xf32, #tpu.memory_space<vmem>>, vector<1x128xf32>
    %1 = vector.shape_cast %0 : vector<1x128xf32> to vector<1x1x128xf32>
    %c0_1 = arith.constant 0 : index
    %c0_2 = arith.constant 0 : index
    %2 = vector.load %arg4[%c0_1, %c0_2] : memref<1x128xf32, #tpu.memory_space<vmem>>, vector<1x128xf32>
    %3 = vector.shape_cast %2 : vector<1x128xf32> to vector<1x1x128xf32>
    %c0_3 = arith.constant 0 : index
    %c0_4 = arith.constant 0 : index
    %c0_5 = arith.constant 0 : index
    %c0_6 = arith.constant 0 : index
    %4 = vector.load %arg2[%c0_3, %c0_4, %c0_5, %c0_6] : memref<1x4x8x128xf32, #tpu.memory_space<vmem>>, vector<1x4x8x128xf32>
    %5 = vector.shape_cast %4 : vector<1x4x8x128xf32> to vector<4x8x128xf32>
    %6 = vector.broadcast %1 : vector<1x1x128xf32> to vector<4x8x128xf32>
    %7 = arith.mulf %5, %6 : vector<4x8x128xf32>
    %8 = vector.broadcast %3 : vector<1x1x128xf32> to vector<4x8x128xf32>
    %9 = arith.addf %7, %8 : vector<4x8x128xf32>
    %cst = arith.constant 0.000000e+00 : f32
    %10 = vector.broadcast %cst : f32 to vector<4x8x128xf32>
    %11 = arith.maximumf %9, %10 : vector<4x8x128xf32>
    %c0_7 = arith.constant 0 : index
    %c0_8 = arith.constant 0 : index
    %c0_9 = arith.constant 0 : index
    %c0_10 = arith.constant 0 : index
    %12 = vector.load %arg5[%c0_7, %c0_8, %c0_9, %c0_10] : memref<1x4x8x128xf32, #tpu.memory_space<vmem>>, vector<1x4x8x128xf32>
    %13 = vector.shape_cast %12 : vector<1x4x8x128xf32> to vector<4x8x128xf32>
    %14 = vector.shape_cast %11 : vector<4x8x128xf32> to vector<1x4x8x128xf32>
    tpu.vector_store %arg5[%c0_7, %c0_8, %c0_9, %c0_10], %14 {strides = array<i32>} : memref<1x4x8x128xf32, #tpu.memory_space<vmem>>, vector<1x4x8x128xf32>,
    return
  }
  func.func @transform_0(%arg0: i32, %arg1: i32) -> (i32, i32, i32, i32) {
    %c0_i32 = arith.constant 0 : i32
    %c0_i32_0 = arith.constant 0 : i32
    %c0_i32_1 = arith.constant 0 : i32
    return %arg0, %arg1, %c0_i32, %c0_i32_0 : i32, i32, i32, i32
  }
  func.func @transform_1(%arg0: i32, %arg1: i32) -> (i32, i32) {
    %c0_i32 = arith.constant 0 : i32
    %c0_i32_0 = arith.constant 0 : i32
    %c0_i32_1 = arith.constant 0 : i32
    return %c0_i32, %c0_i32_0 : i32, i32
  }
  func.func @transform_2(%arg0: i32, %arg1: i32) -> (i32, i32) {
    %c0_i32 = arith.constant 0 : i32
    %c0_i32_0 = arith.constant 0 : i32
    %c0_i32_1 = arith.constant 0 : i32
    return %c0_i32, %c0_i32_0 : i32, i32
  }
  func.func @transform_3(%arg0: i32, %arg1: i32) -> (i32, i32, i32, i32) {
    %c0_i32 = arith.constant 0 : i32
    %c0_i32_0 = arith.constant 0 : i32
    %c0_i32_1 = arith.constant 0 : i32
    return %arg0, %arg1, %c0_i32, %c0_i32_0 : i32, i32, i32, i32
  }
}

module attributes {stable_mosaic.version = 11 : i64} {
  func.func @conv3x3_stats_kernel(%arg0: i32, %arg1: i32, %arg2: memref<1x1x6x10x4xf32, #tpu.memory_space<vmem>>, %arg3: memref<3x3x4x128xf32, #tpu.memory_space<vmem>>, %arg4: memref<1x4x8x128xf32, #tpu.memory_space<vmem>>, %arg5: memref<1x1x2x128xf32, #tpu.memory_space<vmem>>) attributes {dimension_semantics = [#tpu.dimension_semantics<parallel>, #tpu.dimension_semantics<parallel>], iteration_bounds = array<i64: 2, 2>, scalar_prefetch = 0 : i64, scratch_operands = 0 : i64, tpu.core_type = #tpu.core_type<tc>, window_params = [{transform_indices = @transform_0, window_bounds = array<i64: 1, 1, 6, 10, 4>}, {pipeline_mode = #tpu.pipeline_mode<synchronous>, transform_indices = @transform_1, window_bounds = array<i64: 3, 3, 4, 128>}, {transform_indices = @transform_2, window_bounds = array<i64: 1, 4, 8, 128>}, {transform_indices = @transform_3, window_bounds = array<i64: 1, 1, 2, 128>}]} {
    %c0 = arith.constant 0 : index
    %c0_0 = arith.constant 0 : index
    %c0_1 = arith.constant 0 : index
    %c0_2 = arith.constant 0 : index
    %c0_3 = arith.constant 0 : index
    %0 = vector.load %arg2[%c0, %c0_0, %c0_1, %c0_2, %c0_3] : memref<1x1x6x10x4xf32, #tpu.memory_space<vmem>>, vector<1x1x6x10x4xf32>
    %1 = vector.shape_cast %0 : vector<1x1x6x10x4xf32> to vector<6x10x4xf32>
    %cst = arith.constant 0.000000e+00 : f32
    %2 = vector.broadcast %cst : f32 to vector<32x128xf32>
    %3 = vector.extract_strided_slice %1 {offsets = [0, 0, 0], sizes = [4, 8, 4], strides = [1, 1, 1]} : vector<6x10x4xf32> to vector<4x8x4xf32>
    %4 = vector.shape_cast %3 : vector<4x8x4xf32> to vector<32x4xf32>
    %c0_4 = arith.constant 0 : index
    %c0_5 = arith.constant 0 : index
    %c0_6 = arith.constant 0 : index
    %c0_7 = arith.constant 0 : index
    %5 = vector.load %arg3[%c0_4, %c0_5, %c0_6, %c0_7] : memref<3x3x4x128xf32, #tpu.memory_space<vmem>>, vector<1x1x4x128xf32>
    %6 = vector.shape_cast %5 : vector<1x1x4x128xf32> to vector<4x128xf32>
    %cst_8 = arith.constant dense<0.000000e+00> : vector<32x128xf32>
    %7 = tpu.matmul %4, %6, %cst_8 {dimension_numbers = #tpu.dot_dimension_numbers<[1], [0], [0], [1], [0, 0, 1, 1], [], []>} : vector<32x4xf32>, vector<4x128xf32>, vector<32x128xf32> -> vector<32x128xf32>
    %8 = arith.addf %2, %7 : vector<32x128xf32>
    %9 = vector.extract_strided_slice %1 {offsets = [0, 1, 0], sizes = [4, 8, 4], strides = [1, 1, 1]} : vector<6x10x4xf32> to vector<4x8x4xf32>
    %10 = vector.shape_cast %9 : vector<4x8x4xf32> to vector<32x4xf32>
    %c0_9 = arith.constant 0 : index
    %c1 = arith.constant 1 : index
    %c0_10 = arith.constant 0 : index
    %c0_11 = arith.constant 0 : index
    %11 = vector.load %arg3[%c0_9, %c1, %c0_10, %c0_11] : memref<3x3x4x128xf32, #tpu.memory_space<vmem>>, vector<1x1x4x128xf32>
    %12 = vector.shape_cast %11 : vector<1x1x4x128xf32> to vector<4x128xf32>
    %cst_12 = arith.constant dense<0.000000e+00> : vector<32x128xf32>
    %13 = tpu.matmul %10, %12, %cst_12 {dimension_numbers = #tpu.dot_dimension_numbers<[1], [0], [0], [1], [0, 0, 1, 1], [], []>} : vector<32x4xf32>, vector<4x128xf32>, vector<32x128xf32> -> vector<32x128xf32>
    %14 = arith.addf %8, %13 : vector<32x128xf32>
    %15 = vector.extract_strided_slice %1 {offsets = [0, 2, 0], sizes = [4, 8, 4], strides = [1, 1, 1]} : vector<6x10x4xf32> to vector<4x8x4xf32>
    %16 = vector.shape_cast %15 : vector<4x8x4xf32> to vector<32x4xf32>
    %c0_13 = arith.constant 0 : index
    %c2 = arith.constant 2 : index
    %c0_14 = arith.constant 0 : index
    %c0_15 = arith.constant 0 : index
    %17 = vector.load %arg3[%c0_13, %c2, %c0_14, %c0_15] : memref<3x3x4x128xf32, #tpu.memory_space<vmem>>, vector<1x1x4x128xf32>
    %18 = vector.shape_cast %17 : vector<1x1x4x128xf32> to vector<4x128xf32>
    %cst_16 = arith.constant dense<0.000000e+00> : vector<32x128xf32>
    %19 = tpu.matmul %16, %18, %cst_16 {dimension_numbers = #tpu.dot_dimension_numbers<[1], [0], [0], [1], [0, 0, 1, 1], [], []>} : vector<32x4xf32>, vector<4x128xf32>, vector<32x128xf32> -> vector<32x128xf32>
    %20 = arith.addf %14, %19 : vector<32x128xf32>
    %21 = vector.extract_strided_slice %1 {offsets = [1, 0, 0], sizes = [4, 8, 4], strides = [1, 1, 1]} : vector<6x10x4xf32> to vector<4x8x4xf32>
    %22 = vector.shape_cast %21 : vector<4x8x4xf32> to vector<32x4xf32>
    %c1_17 = arith.constant 1 : index
    %c0_18 = arith.constant 0 : index
    %c0_19 = arith.constant 0 : index
    %c0_20 = arith.constant 0 : index
    %23 = vector.load %arg3[%c1_17, %c0_18, %c0_19, %c0_20] : memref<3x3x4x128xf32, #tpu.memory_space<vmem>>, vector<1x1x4x128xf32>
    %24 = vector.shape_cast %23 : vector<1x1x4x128xf32> to vector<4x128xf32>
    %cst_21 = arith.constant dense<0.000000e+00> : vector<32x128xf32>
    %25 = tpu.matmul %22, %24, %cst_21 {dimension_numbers = #tpu.dot_dimension_numbers<[1], [0], [0], [1], [0, 0, 1, 1], [], []>} : vector<32x4xf32>, vector<4x128xf32>, vector<32x128xf32> -> vector<32x128xf32>
    %26 = arith.addf %20, %25 : vector<32x128xf32>
    %27 = vector.extract_strided_slice %1 {offsets = [1, 1, 0], sizes = [4, 8, 4], strides = [1, 1, 1]} : vector<6x10x4xf32> to vector<4x8x4xf32>
    %28 = vector.shape_cast %27 : vector<4x8x4xf32> to vector<32x4xf32>
    %c1_22 = arith.constant 1 : index
    %c1_23 = arith.constant 1 : index
    %c0_24 = arith.constant 0 : index
    %c0_25 = arith.constant 0 : index
    %29 = vector.load %arg3[%c1_22, %c1_23, %c0_24, %c0_25] : memref<3x3x4x128xf32, #tpu.memory_space<vmem>>, vector<1x1x4x128xf32>
    %30 = vector.shape_cast %29 : vector<1x1x4x128xf32> to vector<4x128xf32>
    %cst_26 = arith.constant dense<0.000000e+00> : vector<32x128xf32>
    %31 = tpu.matmul %28, %30, %cst_26 {dimension_numbers = #tpu.dot_dimension_numbers<[1], [0], [0], [1], [0, 0, 1, 1], [], []>} : vector<32x4xf32>, vector<4x128xf32>, vector<32x128xf32> -> vector<32x128xf32>
    %32 = arith.addf %26, %31 : vector<32x128xf32>
    %33 = vector.extract_strided_slice %1 {offsets = [1, 2, 0], sizes = [4, 8, 4], strides = [1, 1, 1]} : vector<6x10x4xf32> to vector<4x8x4xf32>
    %34 = vector.shape_cast %33 : vector<4x8x4xf32> to vector<32x4xf32>
    %c1_27 = arith.constant 1 : index
    %c2_28 = arith.constant 2 : index
    %c0_29 = arith.constant 0 : index
    %c0_30 = arith.constant 0 : index
    %35 = vector.load %arg3[%c1_27, %c2_28, %c0_29, %c0_30] : memref<3x3x4x128xf32, #tpu.memory_space<vmem>>, vector<1x1x4x128xf32>
    %36 = vector.shape_cast %35 : vector<1x1x4x128xf32> to vector<4x128xf32>
    %cst_31 = arith.constant dense<0.000000e+00> : vector<32x128xf32>
    %37 = tpu.matmul %34, %36, %cst_31 {dimension_numbers = #tpu.dot_dimension_numbers<[1], [0], [0], [1], [0, 0, 1, 1], [], []>} : vector<32x4xf32>, vector<4x128xf32>, vector<32x128xf32> -> vector<32x128xf32>
    %38 = arith.addf %32, %37 : vector<32x128xf32>
    %39 = vector.extract_strided_slice %1 {offsets = [2, 0, 0], sizes = [4, 8, 4], strides = [1, 1, 1]} : vector<6x10x4xf32> to vector<4x8x4xf32>
    %40 = vector.shape_cast %39 : vector<4x8x4xf32> to vector<32x4xf32>
    %c2_32 = arith.constant 2 : index
    %c0_33 = arith.constant 0 : index
    %c0_34 = arith.constant 0 : index
    %c0_35 = arith.constant 0 : index
    %41 = vector.load %arg3[%c2_32, %c0_33, %c0_34, %c0_35] : memref<3x3x4x128xf32, #tpu.memory_space<vmem>>, vector<1x1x4x128xf32>
    %42 = vector.shape_cast %41 : vector<1x1x4x128xf32> to vector<4x128xf32>
    %cst_36 = arith.constant dense<0.000000e+00> : vector<32x128xf32>
    %43 = tpu.matmul %40, %42, %cst_36 {dimension_numbers = #tpu.dot_dimension_numbers<[1], [0], [0], [1], [0, 0, 1, 1], [], []>} : vector<32x4xf32>, vector<4x128xf32>, vector<32x128xf32> -> vector<32x128xf32>
    %44 = arith.addf %38, %43 : vector<32x128xf32>
    %45 = vector.extract_strided_slice %1 {offsets = [2, 1, 0], sizes = [4, 8, 4], strides = [1, 1, 1]} : vector<6x10x4xf32> to vector<4x8x4xf32>
    %46 = vector.shape_cast %45 : vector<4x8x4xf32> to vector<32x4xf32>
    %c2_37 = arith.constant 2 : index
    %c1_38 = arith.constant 1 : index
    %c0_39 = arith.constant 0 : index
    %c0_40 = arith.constant 0 : index
    %47 = vector.load %arg3[%c2_37, %c1_38, %c0_39, %c0_40] : memref<3x3x4x128xf32, #tpu.memory_space<vmem>>, vector<1x1x4x128xf32>
    %48 = vector.shape_cast %47 : vector<1x1x4x128xf32> to vector<4x128xf32>
    %cst_41 = arith.constant dense<0.000000e+00> : vector<32x128xf32>
    %49 = tpu.matmul %46, %48, %cst_41 {dimension_numbers = #tpu.dot_dimension_numbers<[1], [0], [0], [1], [0, 0, 1, 1], [], []>} : vector<32x4xf32>, vector<4x128xf32>, vector<32x128xf32> -> vector<32x128xf32>
    %50 = arith.addf %44, %49 : vector<32x128xf32>
    %51 = vector.extract_strided_slice %1 {offsets = [2, 2, 0], sizes = [4, 8, 4], strides = [1, 1, 1]} : vector<6x10x4xf32> to vector<4x8x4xf32>
    %52 = vector.shape_cast %51 : vector<4x8x4xf32> to vector<32x4xf32>
    %c2_42 = arith.constant 2 : index
    %c2_43 = arith.constant 2 : index
    %c0_44 = arith.constant 0 : index
    %c0_45 = arith.constant 0 : index
    %53 = vector.load %arg3[%c2_42, %c2_43, %c0_44, %c0_45] : memref<3x3x4x128xf32, #tpu.memory_space<vmem>>, vector<1x1x4x128xf32>
    %54 = vector.shape_cast %53 : vector<1x1x4x128xf32> to vector<4x128xf32>
    %cst_46 = arith.constant dense<0.000000e+00> : vector<32x128xf32>
    %55 = tpu.matmul %52, %54, %cst_46 {dimension_numbers = #tpu.dot_dimension_numbers<[1], [0], [0], [1], [0, 0, 1, 1], [], []>} : vector<32x4xf32>, vector<4x128xf32>, vector<32x128xf32> -> vector<32x128xf32>
    %56 = arith.addf %50, %55 : vector<32x128xf32>
    %57 = vector.shape_cast %56 : vector<32x128xf32> to vector<4x8x128xf32>
    %c0_47 = arith.constant 0 : index
    %c0_48 = arith.constant 0 : index
    %c0_49 = arith.constant 0 : index
    %c0_50 = arith.constant 0 : index
    %58 = vector.load %arg4[%c0_47, %c0_48, %c0_49, %c0_50] : memref<1x4x8x128xf32, #tpu.memory_space<vmem>>, vector<1x4x8x128xf32>
    %59 = vector.shape_cast %58 : vector<1x4x8x128xf32> to vector<4x8x128xf32>
    %60 = vector.shape_cast %57 : vector<4x8x128xf32> to vector<1x4x8x128xf32>
    tpu.vector_store %arg4[%c0_47, %c0_48, %c0_49, %c0_50], %60 {strides = array<i32>} : memref<1x4x8x128xf32, #tpu.memory_space<vmem>>, vector<1x4x8x128xf32>,
    %cst_51 = arith.constant dense<0.000000e+00> : vector<128xf32>
    %61 = vector.multi_reduction <add>, %56, %cst_51 [0] : vector<32x128xf32> to vector<128xf32>
    %62 = vector.shape_cast %61 : vector<128xf32> to vector<1x128xf32>
    %63 = arith.mulf %56, %56 : vector<32x128xf32>
    %cst_52 = arith.constant dense<0.000000e+00> : vector<128xf32>
    %64 = vector.multi_reduction <add>, %63, %cst_52 [0] : vector<32x128xf32> to vector<128xf32>
    %65 = vector.shape_cast %64 : vector<128xf32> to vector<1x128xf32>
    %66 = tpu.concatenate %62, %65 in 0 : vector<1x128xf32>, vector<1x128xf32> -> vector<2x128xf32>
    %c0_53 = arith.constant 0 : index
    %c0_54 = arith.constant 0 : index
    %c0_55 = arith.constant 0 : index
    %c0_56 = arith.constant 0 : index
    %67 = vector.load %arg5[%c0_53, %c0_54, %c0_55, %c0_56] : memref<1x1x2x128xf32, #tpu.memory_space<vmem>>, vector<1x1x2x128xf32>
    %68 = vector.shape_cast %67 : vector<1x1x2x128xf32> to vector<2x128xf32>
    %69 = vector.shape_cast %66 : vector<2x128xf32> to vector<1x1x2x128xf32>
    tpu.vector_store %arg5[%c0_53, %c0_54, %c0_55, %c0_56], %69 {strides = array<i32>} : memref<1x1x2x128xf32, #tpu.memory_space<vmem>>, vector<1x1x2x128xf32>,
    return
  }
  func.func @transform_0(%arg0: i32, %arg1: i32) -> (i32, i32, i32, i32, i32) {
    %c0_i32 = arith.constant 0 : i32
    %c0_i32_0 = arith.constant 0 : i32
    %c0_i32_1 = arith.constant 0 : i32
    %c0_i32_2 = arith.constant 0 : i32
    return %arg0, %arg1, %c0_i32, %c0_i32_0, %c0_i32_1 : i32, i32, i32, i32, i32
  }
  func.func @transform_1(%arg0: i32, %arg1: i32) -> (i32, i32, i32, i32) {
    %c0_i32 = arith.constant 0 : i32
    %c0_i32_0 = arith.constant 0 : i32
    %c0_i32_1 = arith.constant 0 : i32
    %c0_i32_2 = arith.constant 0 : i32
    %c0_i32_3 = arith.constant 0 : i32
    return %c0_i32, %c0_i32_0, %c0_i32_1, %c0_i32_2 : i32, i32, i32, i32
  }
  func.func @transform_2(%arg0: i32, %arg1: i32) -> (i32, i32, i32, i32) {
    %c0_i32 = arith.constant 0 : i32
    %c0_i32_0 = arith.constant 0 : i32
    %c0_i32_1 = arith.constant 0 : i32
    return %arg0, %arg1, %c0_i32, %c0_i32_0 : i32, i32, i32, i32
  }
  func.func @transform_3(%arg0: i32, %arg1: i32) -> (i32, i32, i32, i32) {
    %c0_i32 = arith.constant 0 : i32
    %c0_i32_0 = arith.constant 0 : i32
    %c0_i32_1 = arith.constant 0 : i32
    return %arg0, %arg1, %c0_i32, %c0_i32_0 : i32, i32, i32, i32
  }
}

module attributes {stable_mosaic.version = 11 : i64} {
  func.func @conv3x3_stats_kernel(%arg0: i32, %arg1: i32, %arg2: memref<1x1x6x10x128xf32, #tpu.memory_space<vmem>>, %arg3: memref<3x3x128x128xf32, #tpu.memory_space<vmem>>, %arg4: memref<1x4x8x128xf32, #tpu.memory_space<vmem>>, %arg5: memref<1x1x2x128xf32, #tpu.memory_space<vmem>>) attributes {dimension_semantics = [#tpu.dimension_semantics<parallel>, #tpu.dimension_semantics<parallel>], iteration_bounds = array<i64: 2, 2>, scalar_prefetch = 0 : i64, scratch_operands = 0 : i64, tpu.core_type = #tpu.core_type<tc>, window_params = [{transform_indices = @transform_0, window_bounds = array<i64: 1, 1, 6, 10, 128>}, {pipeline_mode = #tpu.pipeline_mode<synchronous>, transform_indices = @transform_1, window_bounds = array<i64: 3, 3, 128, 128>}, {transform_indices = @transform_2, window_bounds = array<i64: 1, 4, 8, 128>}, {transform_indices = @transform_3, window_bounds = array<i64: 1, 1, 2, 128>}]} {
    %c0 = arith.constant 0 : index
    %c0_0 = arith.constant 0 : index
    %c0_1 = arith.constant 0 : index
    %c0_2 = arith.constant 0 : index
    %c0_3 = arith.constant 0 : index
    %0 = vector.load %arg2[%c0, %c0_0, %c0_1, %c0_2, %c0_3] : memref<1x1x6x10x128xf32, #tpu.memory_space<vmem>>, vector<1x1x6x10x128xf32>
    %1 = vector.shape_cast %0 : vector<1x1x6x10x128xf32> to vector<6x10x128xf32>
    %cst = arith.constant 0.000000e+00 : f32
    %2 = vector.broadcast %cst : f32 to vector<32x128xf32>
    %3 = vector.extract_strided_slice %1 {offsets = [0, 0, 0], sizes = [4, 8, 128], strides = [1, 1, 1]} : vector<6x10x128xf32> to vector<4x8x128xf32>
    %4 = vector.shape_cast %3 : vector<4x8x128xf32> to vector<32x128xf32>
    %c0_4 = arith.constant 0 : index
    %c0_5 = arith.constant 0 : index
    %c0_6 = arith.constant 0 : index
    %c0_7 = arith.constant 0 : index
    %5 = vector.load %arg3[%c0_4, %c0_5, %c0_6, %c0_7] : memref<3x3x128x128xf32, #tpu.memory_space<vmem>>, vector<1x1x128x128xf32>
    %6 = vector.shape_cast %5 : vector<1x1x128x128xf32> to vector<128x128xf32>
    %cst_8 = arith.constant dense<0.000000e+00> : vector<32x128xf32>
    %7 = tpu.matmul %4, %6, %cst_8 {dimension_numbers = #tpu.dot_dimension_numbers<[1], [0], [0], [1], [0, 0, 1, 1], [], []>} : vector<32x128xf32>, vector<128x128xf32>, vector<32x128xf32> -> vector<32x128xf32>
    %8 = arith.addf %2, %7 : vector<32x128xf32>
    %9 = vector.extract_strided_slice %1 {offsets = [0, 1, 0], sizes = [4, 8, 128], strides = [1, 1, 1]} : vector<6x10x128xf32> to vector<4x8x128xf32>
    %10 = vector.shape_cast %9 : vector<4x8x128xf32> to vector<32x128xf32>
    %c0_9 = arith.constant 0 : index
    %c1 = arith.constant 1 : index
    %c0_10 = arith.constant 0 : index
    %c0_11 = arith.constant 0 : index
    %11 = vector.load %arg3[%c0_9, %c1, %c0_10, %c0_11] : memref<3x3x128x128xf32, #tpu.memory_space<vmem>>, vector<1x1x128x128xf32>
    %12 = vector.shape_cast %11 : vector<1x1x128x128xf32> to vector<128x128xf32>
    %cst_12 = arith.constant dense<0.000000e+00> : vector<32x128xf32>
    %13 = tpu.matmul %10, %12, %cst_12 {dimension_numbers = #tpu.dot_dimension_numbers<[1], [0], [0], [1], [0, 0, 1, 1], [], []>} : vector<32x128xf32>, vector<128x128xf32>, vector<32x128xf32> -> vector<32x128xf32>
    %14 = arith.addf %8, %13 : vector<32x128xf32>
    %15 = vector.extract_strided_slice %1 {offsets = [0, 2, 0], sizes = [4, 8, 128], strides = [1, 1, 1]} : vector<6x10x128xf32> to vector<4x8x128xf32>
    %16 = vector.shape_cast %15 : vector<4x8x128xf32> to vector<32x128xf32>
    %c0_13 = arith.constant 0 : index
    %c2 = arith.constant 2 : index
    %c0_14 = arith.constant 0 : index
    %c0_15 = arith.constant 0 : index
    %17 = vector.load %arg3[%c0_13, %c2, %c0_14, %c0_15] : memref<3x3x128x128xf32, #tpu.memory_space<vmem>>, vector<1x1x128x128xf32>
    %18 = vector.shape_cast %17 : vector<1x1x128x128xf32> to vector<128x128xf32>
    %cst_16 = arith.constant dense<0.000000e+00> : vector<32x128xf32>
    %19 = tpu.matmul %16, %18, %cst_16 {dimension_numbers = #tpu.dot_dimension_numbers<[1], [0], [0], [1], [0, 0, 1, 1], [], []>} : vector<32x128xf32>, vector<128x128xf32>, vector<32x128xf32> -> vector<32x128xf32>
    %20 = arith.addf %14, %19 : vector<32x128xf32>
    %21 = vector.extract_strided_slice %1 {offsets = [1, 0, 0], sizes = [4, 8, 128], strides = [1, 1, 1]} : vector<6x10x128xf32> to vector<4x8x128xf32>
    %22 = vector.shape_cast %21 : vector<4x8x128xf32> to vector<32x128xf32>
    %c1_17 = arith.constant 1 : index
    %c0_18 = arith.constant 0 : index
    %c0_19 = arith.constant 0 : index
    %c0_20 = arith.constant 0 : index
    %23 = vector.load %arg3[%c1_17, %c0_18, %c0_19, %c0_20] : memref<3x3x128x128xf32, #tpu.memory_space<vmem>>, vector<1x1x128x128xf32>
    %24 = vector.shape_cast %23 : vector<1x1x128x128xf32> to vector<128x128xf32>
    %cst_21 = arith.constant dense<0.000000e+00> : vector<32x128xf32>
    %25 = tpu.matmul %22, %24, %cst_21 {dimension_numbers = #tpu.dot_dimension_numbers<[1], [0], [0], [1], [0, 0, 1, 1], [], []>} : vector<32x128xf32>, vector<128x128xf32>, vector<32x128xf32> -> vector<32x128xf32>
    %26 = arith.addf %20, %25 : vector<32x128xf32>
    %27 = vector.extract_strided_slice %1 {offsets = [1, 1, 0], sizes = [4, 8, 128], strides = [1, 1, 1]} : vector<6x10x128xf32> to vector<4x8x128xf32>
    %28 = vector.shape_cast %27 : vector<4x8x128xf32> to vector<32x128xf32>
    %c1_22 = arith.constant 1 : index
    %c1_23 = arith.constant 1 : index
    %c0_24 = arith.constant 0 : index
    %c0_25 = arith.constant 0 : index
    %29 = vector.load %arg3[%c1_22, %c1_23, %c0_24, %c0_25] : memref<3x3x128x128xf32, #tpu.memory_space<vmem>>, vector<1x1x128x128xf32>
    %30 = vector.shape_cast %29 : vector<1x1x128x128xf32> to vector<128x128xf32>
    %cst_26 = arith.constant dense<0.000000e+00> : vector<32x128xf32>
    %31 = tpu.matmul %28, %30, %cst_26 {dimension_numbers = #tpu.dot_dimension_numbers<[1], [0], [0], [1], [0, 0, 1, 1], [], []>} : vector<32x128xf32>, vector<128x128xf32>, vector<32x128xf32> -> vector<32x128xf32>
    %32 = arith.addf %26, %31 : vector<32x128xf32>
    %33 = vector.extract_strided_slice %1 {offsets = [1, 2, 0], sizes = [4, 8, 128], strides = [1, 1, 1]} : vector<6x10x128xf32> to vector<4x8x128xf32>
    %34 = vector.shape_cast %33 : vector<4x8x128xf32> to vector<32x128xf32>
    %c1_27 = arith.constant 1 : index
    %c2_28 = arith.constant 2 : index
    %c0_29 = arith.constant 0 : index
    %c0_30 = arith.constant 0 : index
    %35 = vector.load %arg3[%c1_27, %c2_28, %c0_29, %c0_30] : memref<3x3x128x128xf32, #tpu.memory_space<vmem>>, vector<1x1x128x128xf32>
    %36 = vector.shape_cast %35 : vector<1x1x128x128xf32> to vector<128x128xf32>
    %cst_31 = arith.constant dense<0.000000e+00> : vector<32x128xf32>
    %37 = tpu.matmul %34, %36, %cst_31 {dimension_numbers = #tpu.dot_dimension_numbers<[1], [0], [0], [1], [0, 0, 1, 1], [], []>} : vector<32x128xf32>, vector<128x128xf32>, vector<32x128xf32> -> vector<32x128xf32>
    %38 = arith.addf %32, %37 : vector<32x128xf32>
    %39 = vector.extract_strided_slice %1 {offsets = [2, 0, 0], sizes = [4, 8, 128], strides = [1, 1, 1]} : vector<6x10x128xf32> to vector<4x8x128xf32>
    %40 = vector.shape_cast %39 : vector<4x8x128xf32> to vector<32x128xf32>
    %c2_32 = arith.constant 2 : index
    %c0_33 = arith.constant 0 : index
    %c0_34 = arith.constant 0 : index
    %c0_35 = arith.constant 0 : index
    %41 = vector.load %arg3[%c2_32, %c0_33, %c0_34, %c0_35] : memref<3x3x128x128xf32, #tpu.memory_space<vmem>>, vector<1x1x128x128xf32>
    %42 = vector.shape_cast %41 : vector<1x1x128x128xf32> to vector<128x128xf32>
    %cst_36 = arith.constant dense<0.000000e+00> : vector<32x128xf32>
    %43 = tpu.matmul %40, %42, %cst_36 {dimension_numbers = #tpu.dot_dimension_numbers<[1], [0], [0], [1], [0, 0, 1, 1], [], []>} : vector<32x128xf32>, vector<128x128xf32>, vector<32x128xf32> -> vector<32x128xf32>
    %44 = arith.addf %38, %43 : vector<32x128xf32>
    %45 = vector.extract_strided_slice %1 {offsets = [2, 1, 0], sizes = [4, 8, 128], strides = [1, 1, 1]} : vector<6x10x128xf32> to vector<4x8x128xf32>
    %46 = vector.shape_cast %45 : vector<4x8x128xf32> to vector<32x128xf32>
    %c2_37 = arith.constant 2 : index
    %c1_38 = arith.constant 1 : index
    %c0_39 = arith.constant 0 : index
    %c0_40 = arith.constant 0 : index
    %47 = vector.load %arg3[%c2_37, %c1_38, %c0_39, %c0_40] : memref<3x3x128x128xf32, #tpu.memory_space<vmem>>, vector<1x1x128x128xf32>
    %48 = vector.shape_cast %47 : vector<1x1x128x128xf32> to vector<128x128xf32>
    %cst_41 = arith.constant dense<0.000000e+00> : vector<32x128xf32>
    %49 = tpu.matmul %46, %48, %cst_41 {dimension_numbers = #tpu.dot_dimension_numbers<[1], [0], [0], [1], [0, 0, 1, 1], [], []>} : vector<32x128xf32>, vector<128x128xf32>, vector<32x128xf32> -> vector<32x128xf32>
    %50 = arith.addf %44, %49 : vector<32x128xf32>
    %51 = vector.extract_strided_slice %1 {offsets = [2, 2, 0], sizes = [4, 8, 128], strides = [1, 1, 1]} : vector<6x10x128xf32> to vector<4x8x128xf32>
    %52 = vector.shape_cast %51 : vector<4x8x128xf32> to vector<32x128xf32>
    %c2_42 = arith.constant 2 : index
    %c2_43 = arith.constant 2 : index
    %c0_44 = arith.constant 0 : index
    %c0_45 = arith.constant 0 : index
    %53 = vector.load %arg3[%c2_42, %c2_43, %c0_44, %c0_45] : memref<3x3x128x128xf32, #tpu.memory_space<vmem>>, vector<1x1x128x128xf32>
    %54 = vector.shape_cast %53 : vector<1x1x128x128xf32> to vector<128x128xf32>
    %cst_46 = arith.constant dense<0.000000e+00> : vector<32x128xf32>
    %55 = tpu.matmul %52, %54, %cst_46 {dimension_numbers = #tpu.dot_dimension_numbers<[1], [0], [0], [1], [0, 0, 1, 1], [], []>} : vector<32x128xf32>, vector<128x128xf32>, vector<32x128xf32> -> vector<32x128xf32>
    %56 = arith.addf %50, %55 : vector<32x128xf32>
    %57 = vector.shape_cast %56 : vector<32x128xf32> to vector<4x8x128xf32>
    %c0_47 = arith.constant 0 : index
    %c0_48 = arith.constant 0 : index
    %c0_49 = arith.constant 0 : index
    %c0_50 = arith.constant 0 : index
    %58 = vector.load %arg4[%c0_47, %c0_48, %c0_49, %c0_50] : memref<1x4x8x128xf32, #tpu.memory_space<vmem>>, vector<1x4x8x128xf32>
    %59 = vector.shape_cast %58 : vector<1x4x8x128xf32> to vector<4x8x128xf32>
    %60 = vector.shape_cast %57 : vector<4x8x128xf32> to vector<1x4x8x128xf32>
    tpu.vector_store %arg4[%c0_47, %c0_48, %c0_49, %c0_50], %60 {strides = array<i32>} : memref<1x4x8x128xf32, #tpu.memory_space<vmem>>, vector<1x4x8x128xf32>,
    %cst_51 = arith.constant dense<0.000000e+00> : vector<128xf32>
    %61 = vector.multi_reduction <add>, %56, %cst_51 [0] : vector<32x128xf32> to vector<128xf32>
    %62 = vector.shape_cast %61 : vector<128xf32> to vector<1x128xf32>
    %63 = arith.mulf %56, %56 : vector<32x128xf32>
    %cst_52 = arith.constant dense<0.000000e+00> : vector<128xf32>
    %64 = vector.multi_reduction <add>, %63, %cst_52 [0] : vector<32x128xf32> to vector<128xf32>
    %65 = vector.shape_cast %64 : vector<128xf32> to vector<1x128xf32>
    %66 = tpu.concatenate %62, %65 in 0 : vector<1x128xf32>, vector<1x128xf32> -> vector<2x128xf32>
    %c0_53 = arith.constant 0 : index
    %c0_54 = arith.constant 0 : index
    %c0_55 = arith.constant 0 : index
    %c0_56 = arith.constant 0 : index
    %67 = vector.load %arg5[%c0_53, %c0_54, %c0_55, %c0_56] : memref<1x1x2x128xf32, #tpu.memory_space<vmem>>, vector<1x1x2x128xf32>
    %68 = vector.shape_cast %67 : vector<1x1x2x128xf32> to vector<2x128xf32>
    %69 = vector.shape_cast %66 : vector<2x128xf32> to vector<1x1x2x128xf32>
    tpu.vector_store %arg5[%c0_53, %c0_54, %c0_55, %c0_56], %69 {strides = array<i32>} : memref<1x1x2x128xf32, #tpu.memory_space<vmem>>, vector<1x1x2x128xf32>,
    return
  }
  func.func @transform_0(%arg0: i32, %arg1: i32) -> (i32, i32, i32, i32, i32) {
    %c0_i32 = arith.constant 0 : i32
    %c0_i32_0 = arith.constant 0 : i32
    %c0_i32_1 = arith.constant 0 : i32
    %c0_i32_2 = arith.constant 0 : i32
    return %arg0, %arg1, %c0_i32, %c0_i32_0, %c0_i32_1 : i32, i32, i32, i32, i32
  }
  func.func @transform_1(%arg0: i32, %arg1: i32) -> (i32, i32, i32, i32) {
    %c0_i32 = arith.constant 0 : i32
    %c0_i32_0 = arith.constant 0 : i32
    %c0_i32_1 = arith.constant 0 : i32
    %c0_i32_2 = arith.constant 0 : i32
    %c0_i32_3 = arith.constant 0 : i32
    return %c0_i32, %c0_i32_0, %c0_i32_1, %c0_i32_2 : i32, i32, i32, i32
  }
  func.func @transform_2(%arg0: i32, %arg1: i32) -> (i32, i32, i32, i32) {
    %c0_i32 = arith.constant 0 : i32
    %c0_i32_0 = arith.constant 0 : i32
    %c0_i32_1 = arith.constant 0 : i32
    return %arg0, %arg1, %c0_i32, %c0_i32_0 : i32, i32, i32, i32
  }
  func.func @transform_3(%arg0: i32, %arg1: i32) -> (i32, i32, i32, i32) {
    %c0_i32 = arith.constant 0 : i32
    %c0_i32_0 = arith.constant 0 : i32
    %c0_i32_1 = arith.constant 0 : i32
    return %arg0, %arg1, %c0_i32, %c0_i32_0 : i32, i32, i32, i32
  }
}

</mosaic_0001>

<bundles_post_ra>
// kernel: down_forward.5
= control target key start
LH: loop header
LB: loop body
LE: loop exit
PB: predicated region body
PF: predicated region fallthrough
CT: control target
= control target key end

     0   :  { %s449_s12 = smov 0   ;;  %s451_s13 = smov 0   ;;  %s506_s0 = inlined_call_operand.vmem [shape: f32[2,8,8,128], index: 0, kind: input, shape index: {}]   ;;  %s507_s1 = inlined_call_operand.vmem [shape: f32[1,128], index: 1, kind: input, shape index: {}]   ;;  %s508_s2 = inlined_call_operand.vmem [shape: f32[1,128], index: 2, kind: input, shape index: {}]   ;;  %s509_s3 = inlined_call_operand.vmem [shape: f32[2,8,8,128], index: 3, kind: output, shape index: {}]  }
   0x1   :  { %s453_s14 = smov 0   ;;  %s455_s15 = smov 0  }
   0x2   :  { %s457_s16 = smov 0  }
   0x3 LB: > { %s22_s17 = sadd.s32 1, %s419_s14  ;;  %s25_s18 = sadd.s32 1, %s423_s15  ;;  %s427_s16 = sphi %s457_s16, %s13_s16   ;;  %s423_s15 = sphi %s455_s15, %s513_s15   ;;  %s419_s14 = sphi %s453_s14, %s512_s14   ;;  %s415_s13 = sphi %s451_s13, %s511_s13   ;;  %s411_s12 = sphi %s449_s12, %s510_s12  }
   0x4   : > { %p23_p0 = scmp.ge.s32.totalorder %s22_s17, 2  ;;  %p338_p1 = scmp.ge.s32.totalorder %s427_s16, 1 }
   0x5   : > { %p158_p2 = scmp.lt.s32.totalorder %s427_s16, 5 }
   0x6   : > { %s515_s17 = smov (%p23_p0, %s22_s17), 0  ;;  %s517_s18 = smov (!%p23_p0, %s25_s18), %s423_s15 }
   0x7   : > { %p159_p3 = pnand %p338_p1, %p158_p2  ;;  %p27_p4 = scmp.ge.s32.totalorder %s517_s18, 2 }
   0x8   : > { %s339_s19 = sshll.u32 (!%p159_p3), %s411_s12, 2  ;;  %p191_p5 = scmp.lt.s32.totalorder (!%p159_p3), %s415_s13, 1  ;;  %v345_v0 = vld [vmem:[%s507_s1] ss:$0 sm:$0xff] (!%p159_p3) }
   0x9   : > { %s519_s18 = smov (%p27_p4, %s517_s18), 0  ;;  %162 = sbr.rel (%p159_p3) target bundleno = 30 (0x1e), region = 32 }
   0xa   : > { %p193_p6 = scmp.lt.s32.totalorder (!%p159_p3), %s339_s19, 7  ;;  %v346_v1 = vld [vmem:[%s508_s2] ss:$0 sm:$0xff] (!%p159_p3) }
  0x10   : > { %s521_s13 = smov (!%p191_p5, %s415_s13), 1  ;;  %s523_s19 = smov (!%p193_p6, %s339_s19), 7 }
  0x11   : > { %s340_s20 = sshll.u32 %s521_s13, 3 }
  0x12   : > { %s196_s21 = sadd.s32 %s340_s20, %s523_s19 }
  0x13   : > { %s341_s22 = sshll.u32 %s196_s21, 3 }
  0x14   : > { %s198_s27 = scalar_lea.vmem %s506_s0, %s341_s22  ;;  %s208_s5 = scalar_lea.vmem %s509_s3, %s341_s22 }
  0x15   : > { %v212_v2 = vld [vmem:[%s198_s27] sm:$0xff]  ;;  %v213_v3 = vld [vmem:[%s198_s27 + $0x8] sm:$0xff]  ;;  %v214_v4 = vld [vmem:[%s198_s27 + $0x10] sm:$0xff] }
  0x16   : > { %v222_v5 = vmul.f32 %v345_v0, %v212_v2  ;;  %v223_v6 = vmul.f32 %v345_v0, %v213_v3  ;;  %v224_v7 = vmul.f32 %v345_v0, %v214_v4  ;;  %v215_v8 = vld [vmem:[%s198_s27 + $0x18] sm:$0xff] }
  0x17   : > { %v225_v9 = vmul.f32 %v345_v0, %v215_v8 }
  0x18   : > { %v232_v10 = vadd.f32 %v346_v1, %v222_v5  ;;  %v233_v11 = vadd.f32 %v346_v1, %v223_v6  ;;  %v234_v12 = vadd.f32 %v346_v1, %v224_v7 }
  0x19   : > { %v235_v13 = vadd.f32 %v346_v1, %v225_v9 }
  0x1a   : > { %v236_v14 = vmax.f32 %v232_v10, 0.0  ;;  %v237_v15 = vmax.f32 %v233_v11, 0.0  ;;  %v238_v16 = vmax.f32 %v234_v12, 0.0 }
  0x1b   : > { %v239_v17 = vmax.f32 %v235_v13, 0.0 }
  0x1c   : > { %240 = vst [vmem:[%s208_s5] sm:$0xff] %v236_v14  ;;  %241 = vst [vmem:[%s208_s5 + $0x8] sm:$0xff] %v237_v15 }
  0x1d   : > { %242 = vst [vmem:[%s208_s5 + $0x10] sm:$0xff] %v238_v16  ;;  %243 = vst [vmem:[%s208_s5 + $0x18] sm:$0xff] %v239_v17 }
  0x1e PF: > { %s13_s16 = sadd.s32 1, %s427_s16   ;;  %s510_s12 = smov %s419_s14 }
  0x1f   : > { %p10_p7 = scmp.ge.s32.totalorder %s13_s16, 6   ;;  %s511_s13 = smov %s423_s15 }
  0x20   : > { %s512_s14 = smov %s515_s17  ;;  %s513_s15 = smov %s519_s18 }
  0x21   :  { %12 = sbr.rel (!%p10_p7) target bundleno = 3 (0x3), region = 62 }

// kernel: down_forward.4
= control target key start
LH: loop header
LB: loop body
LE: loop exit
PB: predicated region body
PF: predicated region fallthrough
CT: control target
= control target key end

     0   :  { %s1654_s12 = smov 0   ;;  %s1656_s13 = smov 0   ;;  %s1862_s0 = inlined_call_operand.vmem [shape: f32[2,2,6,10,4], index: 0, kind: input, shape index: {}]   ;;  %s1863_s1 = inlined_call_operand.vmem [shape: f32[3,3,4,128], index: 1, kind: input, shape index: {}]   ;;  %s1864_s2 = inlined_call_operand.vmem [shape: f32[2,8,8,128], index: 2, kind: output, shape index: {0}]   ;;  %s1865_s3 = inlined_call_operand.vmem [shape: f32[2,2,2,128], index: 3, kind: output, shape index: {1}]  }
   0x1   :  { %s1658_s14 = smov 0   ;;  %s1660_s15 = smov 0  }
   0x2   :  { %s1662_s16 = smov 0  }
   0x3 LB: > { %s23_s17 = sadd.s32 1, %s1624_s14  ;;  %s26_s18 = sadd.s32 1, %s1628_s15  ;;  %s1632_s16 = sphi %s1662_s16, %s14_s16   ;;  %s1628_s15 = sphi %s1660_s15, %s1869_s15   ;;  %s1624_s14 = sphi %s1658_s14, %s1868_s14   ;;  %s1620_s13 = sphi %s1656_s13, %s1867_s13   ;;  %s1616_s12 = sphi %s1654_s12, %s1866_s12  }
   0x4   : > { %p24_p0 = scmp.ge.s32.totalorder %s23_s17, 2  ;;  %p1339_p1 = scmp.ge.s32.totalorder %s1632_s16, 1 }
   0x5   : > { %p162_p2 = scmp.lt.s32.totalorder %s1632_s16, 5 }
   0x6   : > { %s1871_s17 = smov (%p24_p0, %s23_s17), 0  ;;  %s1873_s18 = smov (!%p24_p0, %s26_s18), %s1628_s15 }
   0x7   : > { %p163_p3 = pnand %p1339_p1, %p162_p2  ;;  %p28_p4 = scmp.ge.s32.totalorder %s1873_s18, 2 }
   0x8   : > { %v1346_v0 = vld [vmem:[%s1863_s1 + $0x4] sm:$0xf] (!%p163_p3)  ;;  %vm274_vm0 = vcmask (!%p163_p3), 1043456   ;;  %v1692_v1 = vld [vmem:[%s1863_s1 + $0x10] sm:$0xf] (!%p163_p3)  ;;  %p202_p5 = scmp.lt.s32.totalorder (!%p163_p3), %s1620_s13, 1 }
   0x9   : > { %s1875_s18 = smov (%p28_p4, %s1873_s18), 0  ;;  %166 = sbr.rel (%p163_p3) target bundleno = 301 (0x12d), region = 28 }
   0xa   : > { %1446 = vmatprep.subr.msk.mxu1 (!%p163_p3), %vm274_vm0, %v1346_v0  ;;  %1478 = vmatprep.subr.msk.mxu0 (!%p163_p3), %vm274_vm0, %v1692_v1  ;;  %p204_p6 = scmp.lt.s32.totalorder (!%p163_p3), %s1616_s12, 1  ;;  %v241_v2 = vld [vmem:[%s1863_s1] sm:$0xf] (!%p163_p3)  ;;  %v1375_v3 = vld [vmem:[%s1863_s1 + $0x14] sm:$0xf] (!%p163_p3)  ;;  %vm250_vm1 = vcmask (!%p163_p3), 1046528  }
   0xb   : > { %1447 = vmatpush3.msk.msra.mxu1 (!%p163_p3), %vm274_vm0, %v1346_v0  ;;  %1479 = vmatpush3.msk.msra.mxu0 (!%p163_p3), %vm274_vm0, %v1692_v1  ;;  %vm265_vm2 = vcmask (!%p163_p3), 31744   ;;  %vm459_vm3 = vcmask (!%p163_p3), 1045504   ;;  %v1357_v25 = vld [vmem:[%s1863_s1 + $0x8] sm:$0xf] (!%p163_p3)  ;;  %v1381_v28 = vld [vmem:[%s1863_s1 + $0x18] sm:$0xf] (!%p163_p3) }
   0xc   : > { %1454 = vmatprep.subr.msk.mxu1 (!%p163_p3), %vm274_vm0, %v241_v2  ;;  %1486 = vmatprep.subr.msk.mxu0 (!%p163_p3), %vm274_vm0, %v1375_v3  ;;  %v1363_v41 = vld [vmem:[%s1863_s1 + $0xc] sm:$0xf] (!%p163_p3)  ;;  %v1387_v42 = vld [vmem:[%s1863_s1 + $0x1c] sm:$0xf] (!%p163_p3)  ;;  %v1393_v45 = vld [vmem:[%s1863_s1 + $0x20] sm:$0xf] (!%p163_p3) }
   0xd   : > { %s1341_s25 = sshll.u32 (!%p163_p3), %s1616_s12, 2  ;;  %vm1192_vm4 = vcmask (!%p163_p3), 1040384  }
   0xe   : > { %p214_p7 = scmp.lt.s32.totalorder (!%p163_p3), %s1341_s25, 7 }
  0x10   : > { %s1877_s13 = smov (!%p202_p5, %s1620_s13), 1  ;;  %s1879_s25 = smov (!%p214_p7, %s1341_s25), 7 }
  0x11   : > { %s1710_s27 = scalar_select %p204_p6, %s1616_s12, 1 }
  0x12   : > { %s1553_s28 = smul.u32 24, %s1877_s13  ;;  %s1342_s26 = sshll.u32 %s1877_s13, 3 }
  0x13   : > { %s1552_s29 = smul.u32 12, %s1710_s27  ;;  %s1344_s12 = sshll.u32 %s1877_s13, 1 }
  0x14   : > { %s226_s6 = sadd.s32 %s1344_s12, %s1710_s27 }
  0x15   : > { %s208_s30 = sadd.s32 %s1553_s28, %s1552_s29  ;;  %s217_s28 = sadd.s32 %s1342_s26, %s1879_s25 }
  0x16   : > { %s1340_s4 = sshll.u32 %s208_s30, 3  ;;  %s1343_s29 = sshll.u32 %s217_s28, 3 }
  0x17   : > { %s1719_s7 = scalar_lea.vmem %s1862_s0, %s1340_s4  ;;  %s219_s5 = scalar_lea.vmem %s1864_s2, %s1343_s29 }
  0x18   : > { %v229_v4 = vld [vmem:[%s1719_s7] sm:$0xff]  ;;  %v230_v5 = vld [vmem:[%s1719_s7 + $0x8] sm:$0x3]  ;;  %v1724_v6 = vld [vmem:[%s1719_s7 + $0x10] sm:$0xff] }
  0x19   : > { %v251_v7 = vrot.slane %v229_v4, 1  ;;  %v252_v8 = vrot.slane %v230_v5, 1  ;;  %v232_v9 = vld [vmem:[%s1719_s7 + $0x18] sm:$0x3]  ;;  %v254_v10 = vrot.slane %v1724_v6, 1  ;;  %v1729_v13 = vld [vmem:[%s1719_s7 + $0x20] sm:$0xff] }
  0x1a   : > { %v255_v11 = vrot.slane %v232_v9, 1  ;;  %v464_v12 = vrot.slane %v232_v9, 2  ;;  %v234_v14 = vld [vmem:[%s1719_s7 + $0x28] sm:$0x3]  ;;  %v1733_v15 = vld [vmem:[%s1719_s7 + $0x30] sm:$0xff]  ;;  %v257_v17 = vrot.slane %v1729_v13, 1 }
  0x1b   : > { %v253_v16 = vsel %vm250_vm1, %v251_v7, %v252_v8  ;;  %v258_v18 = vrot.slane %v234_v14, 1  ;;  %v236_v19 = vld [vmem:[%s1719_s7 + $0x38] sm:$0x3]  ;;  %v260_v21 = vrot.slane %v1733_v15, 1  ;;  %v463_v23 = vrot.slane %v1724_v6, 2  ;;  %v237_v31 = vld [vmem:[%s1719_s7 + $0x40] sm:$0xff] }
  0x1c   : > { %1448 = vmatprep.mubr.msk.f32.mxu1 %vm265_vm2, %v253_v16  ;;  %v256_v20 = vsel %vm250_vm1, %v254_v10, %v255_v11  ;;  %v261_v22 = vrot.slane %v236_v19, 1  ;;  %v467_v29 = vrot.slane %v234_v14, 2  ;;  %v466_v30 = vrot.slane %v1729_v13, 2  ;;  %v238_v32 = vld [vmem:[%s1719_s7 + $0x48] sm:$0x3]  ;;  %v239_v46 = vld [vmem:[%s1719_s7 + $0x50] sm:$0xff] }
  0x1d   : > { %1480 = vmatprep.mubr.msk.f32.mxu0 %vm265_vm2, %v256_v20  ;;  %1449 = vmatmul.mubr.msk.f32.vlgmr.msra.gmra.mrb[0].mxu1 %vm265_vm2, %v256_v20  ;;  %v259_v24 = vsel %vm250_vm1, %v257_v17, %v258_v18  ;;  %v465_v27 = vsel %vm459_vm3, %v463_v23, %v464_v12  ;;  %v469_v33 = vrot.slane %v1733_v15, 2  ;;  %v470_v34 = vrot.slane %v236_v19, 2  ;;  %v240_v47 = vld [vmem:[%s1719_s7 + $0x58] sm:$0x3]  ;;  %s1345_s7 = sshll.u32 %s226_s6, 1 }
  0x1e   : > { %1455 = vmatpush3.msk.msra.mxu1 %vm274_vm0, %v241_v2  ;;  %1481 = vmatmul.mubr.msk.f32.vlgmr.msra.gmra.mrb[0].mxu0 %vm265_vm2, %v259_v24  ;;  %v1751_v26 = vsel %vm250_vm1, %v260_v21, %v261_v22  ;;  %v461_v35 = vrot.slane %v230_v5, 2  ;;  %v468_v36 = vsel %vm459_vm3, %v466_v30, %v467_v29  ;;  %v771_v37 = vrot.slane %v237_v31, 2  ;;  %s228_s10 = scalar_lea.vmem %s1865_s3, %s1345_s7 }
  0x1f   : > { %1487 = vmatpush3.msk.msra.mxu0 %vm274_vm0, %v1375_v3  ;;  %1451 = vmatprep.mubr.msk.f32.mxu1 %vm265_vm2, %v259_v24  ;;  %v772_v38 = vrot.slane %v238_v32, 2  ;;  %v460_v39 = vrot.slane %v229_v4, 2  ;;  %v471_v40 = vsel %vm459_vm3, %v469_v33, %v470_v34  ;;  %v672_v48 = vrot.slane %v237_v31, 1 }
  0x20   : > { %1462 = vmatprep.subr.msk.mxu1 %vm274_vm0, %v1357_v25  ;;  %1488 = vmatprep.mubr.msk.f32.mxu0 %vm265_vm2, %v465_v27  ;;  %v673_v49 = vrot.slane %v238_v32, 1  ;;  %v968_v50 = vrot.slane %v239_v46, 1  ;;  %v969_v51 = vrot.slane %v240_v47, 1  ;;  %v1067_v54 = vrot.slane %v239_v46, 2 }
  0x21   : > { %1452 = vmatmul.mubr.msk.f32.gmra.mrb[2].mxu1 %vm265_vm2, %v1751_v26  ;;  %1494 = vmatprep.subr.msk.mxu0 %vm274_vm0, %v1381_v28  ;;  %v773_v43 = vsel %vm459_vm3, %v771_v37, %v772_v38  ;;  %v462_v44 = vsel %vm459_vm3, %v460_v39, %v461_v35  ;;  %v1068_v55 = vrot.slane %v240_v47, 2 }
  0x22   : > { %1456 = vmatprep.mubr.msk.f32.mxu1 %vm265_vm2, %v229_v4  ;;  %v674_v52 = vsel %vm250_vm1, %v672_v48, %v673_v49  ;;  %v970_v53 = vsel %vm250_vm1, %v968_v50, %v969_v51 }
  0x23   : > { %v1069_v56 = vsel %vm459_vm3, %v1067_v54, %v1068_v55 }
  0x25   : > { %1457 = vmatmul.mubr.msk.f32.vlgmr.msra.gmra.mrb[0].mxu1 %vm265_vm2, %v1724_v6 }
  0x26   : > { %1463 = vmatpush3.msk.msra.mxu1 %vm274_vm0, %v1357_v25  ;;  %1489 = vmatmul.mubr.msk.f32.vlgmr.msra.gmra.mrb[0].mxu0 %vm265_vm2, %v468_v36 }
  0x27   : > { %1495 = vmatpush3.msk.msra.mxu0 %vm274_vm0, %v1381_v28  ;;  %1459 = vmatprep.mubr.msk.f32.mxu1 %vm265_vm2, %v1729_v13 }
  0x28   : > { %1491 = vmatprep.mubr.msk.f32.mxu0 %vm265_vm2, %v471_v40  ;;  %1470 = vmatprep.subr.msk.mxu1 %vm274_vm0, %v1363_v41 }
  0x29   : > { %1460 = vmatmul.mubr.msk.f32.gmra.mrb[2].mxu1 %vm265_vm2, %v1733_v15  ;;  %1502 = vmatprep.subr.msk.mxu0 %vm274_vm0, %v1387_v42 }
  0x2a   : > { %1492 = vmatmul.mubr.msk.f32.gmra.mrb[2].mxu0 %vm265_vm2, %v773_v43  ;;  %1464 = vmatprep.mubr.msk.f32.mxu1 %vm265_vm2, %v462_v44 }
  0x2b   : > { %1496 = vmatprep.mubr.msk.f32.mxu0 %vm265_vm2, %v1729_v13 }
  0x2d   : > { %1465 = vmatmul.mubr.msk.f32.vlgmr.msra.gmra.mrb[0].mxu1 %vm265_vm2, %v465_v27 }
  0x2e   : > { %1471 = vmatpush3.msk.msra.mxu1 %vm274_vm0, %v1363_v41  ;;  %1497 = vmatmul.mubr.msk.f32.vlgmr.msra.gmra.mrb[0].mxu0 %vm265_vm2, %v1733_v15 }
  0x2f   : > { %1503 = vmatpush3.msk.msra.mxu0 %vm274_vm0, %v1387_v42  ;;  %1467 = vmatprep.mubr.msk.f32.mxu1 %vm265_vm2, %v468_v36 }
  0x30   : > { %1499 = vmatprep.mubr.msk.f32.mxu0 %vm265_vm2, %v237_v31  ;;  %1518 = vmatprep.subr.msk.mxu1 %vm274_vm0, %v1692_v1 }
  0x31   : > { %1468 = vmatmul.mubr.msk.f32.gmra.mrb[2].mxu1 %vm265_vm2, %v471_v40  ;;  %1510 = vmatprep.subr.msk.mxu0 %vm274_vm0, %v1393_v45 }
  0x32   : > { %1500 = vmatmul.mubr.msk.f32.gmra.mrb[2].mxu0 %vm265_vm2, %v239_v46  ;;  %1472 = vmatprep.mubr.msk.f32.mxu1 %vm265_vm2, %v1724_v6 }
  0x33   : > { %1504 = vmatprep.mubr.msk.f32.mxu0 %vm265_vm2, %v259_v24 }
  0x35   : > { %1473 = vmatmul.mubr.msk.f32.vlgmr.msra.gmra.mrb[0].mxu1 %vm265_vm2, %v1729_v13 }
  0x36   : > { %1519 = vmatpush3.msk.msra.mxu1 %vm274_vm0, %v1692_v1  ;;  %1505 = vmatmul.mubr.msk.f32.vlgmr.msra.gmra.mrb[0].mxu0 %vm265_vm2, %v1751_v26 }
  0x37   : > { %1511 = vmatpush3.msk.msra.mxu0 %vm274_vm0, %v1393_v45  ;;  %1475 = vmatprep.mubr.msk.f32.mxu1 %vm265_vm2, %v1733_v15 }
  0x38   : > { %1507 = vmatprep.mubr.msk.f32.mxu0 %vm265_vm2, %v674_v52 }
  0x39   : > { %1476 = vmatmul.mubr.msk.f32.gmra.mrb[2].mxu1 %vm265_vm2, %v237_v31 }
  0x3a   : > { %1508 = vmatmul.mubr.msk.f32.gmra.mrb[2].mxu0 %vm265_vm2, %v970_v53  ;;  %1483 = vmatprep.mubr.msk.f32.mxu1 %vm265_vm2, %v1751_v26 }
  0x3b   : > { %1512 = vmatprep.mubr.msk.f32.mxu0 %vm265_vm2, %v468_v36 }
  0x3e   : > { %1513 = vmatmul.mubr.msk.f32.vlgmr.msra.gmra.mrb[0].mxu0 %vm265_vm2, %v471_v40 }
  0x3f   : > { %1515 = vmatprep.mubr.msk.f32.mxu0 %vm265_vm2, %v773_v43 }
  0x41   : > { %1484 = vmatmul.mubr.msk.f32.vlgmr.msra.gmra.mrb[2].mxu1 %vm265_vm2, %v674_v52 }
  0x42   : > { %1516 = vmatmul.mubr.msk.f32.gmra.mrb[2].mxu0 %vm265_vm2, %v1069_v56 }
 0x108   : > { %v1474_v57 = vpop.f32.mrb[0].mxu1 }
 0x109   : > { %v648_v58 = vpop.f32.mrb[1].mxu1 }
 0x111   : > { %v1514_v59 = vpop.f32.mrb[0].mxu0 }
 0x112   : > { %v1520_v60 = vadd.f32 %v1514_v59, %v1474_v57  ;;  %v1143_v61 = vpop.f32.mrb[1].mxu0 }
 0x113   : > { %v1521_v62 = vadd.f32 %v1143_v61, %v648_v58 }
 0x114   : > { %1167 = vst [vmem:[%s219_s5 + $0x8] sm:$0xff] %v1520_v60  ;;  %v1180_v63 = vmul.f32 %v1520_v60, %v1520_v60  ;;  %v1485_v0 = vpop.f32.mrb[2].mxu1 }
 0x115   : > { %1166 = vst [vmem:[%s219_s5] sm:$0xff] %v1521_v62  ;;  %v1170_v1 = vadd.f32 %v1521_v62, %v1520_v60  ;;  %v1179_v2 = vmul.f32 %v1521_v62, %v1521_v62  ;;  %v1517_v3 = vpop.f32.mrb[2].mxu0  ;;  %v758_v4 = vpop.f32.mrb[3].mxu1 }
 0x116   : > { %v1522_v5 = vadd.f32 %v1517_v3, %v1485_v0  ;;  %v1153_v6 = vpop.f32.mrb[3].mxu0 }
 0x117   : > { %v1183_v7 = vadd.f32 %v1180_v63, %v1179_v2  ;;  %v1523_v8 = vadd.f32 %v1153_v6, %v758_v4 }
 0x118   : > { %1169 = vst [vmem:[%s219_s5 + $0x18] sm:$0xff] %v1522_v5  ;;  %v1182_v11 = vmul.f32 %v1522_v5, %v1522_v5 }
 0x119   : > { %1168 = vst [vmem:[%s219_s5 + $0x10] sm:$0xff] %v1523_v8  ;;  %v1171_v9 = vadd.f32 %v1523_v8, %v1170_v1  ;;  %v1181_v10 = vmul.f32 %v1523_v8, %v1523_v8 }
 0x11b   : > { %v1172_v12 = vadd.f32 %v1522_v5, %v1171_v9  ;;  %v1184_v13 = vadd.f32 %v1183_v7, %v1181_v10 }
 0x11d   : > { %v1173_v14 = vrot.slane %v1172_v12, 4  ;;  %v1185_v15 = vadd.f32 %v1184_v13, %v1182_v11 }
 0x11f   : > { %v1174_v16 = vadd.f32 %v1173_v14, %v1172_v12  ;;  %v1186_v17 = vrot.slane %v1185_v15, 4 }
 0x121   : > { %v1175_v18 = vrot.slane %v1174_v16, 2  ;;  %v1187_v19 = vadd.f32 %v1186_v17, %v1185_v15 }
 0x123   : > { %v1176_v20 = vadd.f32 %v1175_v18, %v1174_v16  ;;  %v1188_v21 = vrot.slane %v1187_v19, 2 }
 0x125   : > { %v1177_v22 = vrot.slane %v1176_v20, 1  ;;  %v1189_v23 = vadd.f32 %v1188_v21, %v1187_v19 }
 0x127   : > { %v1190_v24 = vrot.slane %v1189_v23, 1  ;;  %v1178_v25 = vadd.f32 %v1177_v22, %v1176_v20 }
 0x129   : > { %v1191_v26 = vadd.f32 %v1190_v24, %v1189_v23 }
 0x12b   : > { %v1193_v27 = vsel %vm1192_vm4, %v1178_v25, %v1191_v26 }
 0x12c   : > { %1194 = vst [vmem:[%s228_s10] sm:$0x3] %v1193_v27 }
 0x12d PF: > { %s14_s16 = sadd.s32 1, %s1632_s16   ;;  %s1866_s12 = smov %s1624_s14 }
 0x12e   : > { %p11_p8 = scmp.ge.s32.totalorder %s14_s16, 6   ;;  %s1867_s13 = smov %s1628_s15 }
 0x12f   : > { %s1868_s14 = smov %s1871_s17  ;;  %s1869_s15 = smov %s1875_s18 }
 0x130   :  { %13 = sbr.rel (!%p11_p8) target bundleno = 3 (0x3), region = 78 }

// kernel: down_forward.6
= control target key start
LH: loop header
LB: loop body
LE: loop exit
PB: predicated region body
PF: predicated region fallthrough
CT: control target
= control target key end

     0   :  { %s2518_s12 = smov 0   ;;  %s2520_s13 = smov 0   ;;  %s3140_s0 = inlined_call_operand.vmem [shape: f32[2,2,6,10,128], index: 0, kind: input, shape index: {}]   ;;  %s3141_s1 = inlined_call_operand.vmem [shape: f32[3,3,128,128], index: 1, kind: input, shape index: {}]   ;;  %s3142_s2 = inlined_call_operand.vmem [shape: f32[2,8,8,128], index: 2, kind: output, shape index: {0}]   ;;  %s3143_s3 = inlined_call_operand.vmem [shape: f32[2,2,2,128], index: 3, kind: output, shape index: {1}]  }
   0x1   :  { %s2522_s14 = smov 0   ;;  %s2524_s15 = smov 0  }
   0x2   :  { %s2526_s16 = smov 0  }
   0x3 LB: > { %s23_s17 = sadd.s32 1, %s2488_s14  ;;  %s26_s18 = sadd.s32 1, %s2492_s15  ;;  %s2496_s16 = sphi %s2526_s16, %s14_s16   ;;  %s2492_s15 = sphi %s2524_s15, %s3147_s15   ;;  %s2488_s14 = sphi %s2522_s14, %s3146_s14   ;;  %s2484_s13 = sphi %s2520_s13, %s3145_s13   ;;  %s2480_s12 = sphi %s2518_s12, %s3144_s12  }
   0x4   : > { %p24_p0 = scmp.ge.s32.totalorder %s23_s17, 2  ;;  %p1421_p1 = scmp.ge.s32.totalorder %s2496_s16, 1 }
   0x5   : > { %p162_p2 = scmp.lt.s32.totalorder %s2496_s16, 5 }
   0x6   : > { %s3149_s17 = smov (%p24_p0, %s23_s17), 0  ;;  %s3151_s18 = smov (!%p24_p0, %s26_s18), %s2492_s15 }
   0x7   : > { %p163_p3 = pnand %p1421_p1, %p162_p2  ;;  %p28_p4 = scmp.ge.s32.totalorder %s3151_s18, 2 }
   0x8   : > { %v1428_v0 = vld [vmem:[%s3141_s1 + $0x80] sm:$0xff] (!%p163_p3)  ;;  %v1429_v1 = vld [vmem:[%s3141_s1 + $0x88] sm:$0xff] (!%p163_p3)  ;;  %p202_p5 = scmp.lt.s32.totalorder (!%p163_p3), %s2484_s13, 1  ;;  %p204_p6 = scmp.lt.s32.totalorder (!%p163_p3), %s2480_s12, 1  ;;  %v1430_v5 = vld [vmem:[%s3141_s1 + $0x90] sm:$0xff] (!%p163_p3)  ;;  %vm265_vm0 = vcmask (!%p163_p3), 1046528  }
   0x9   : > { %s3153_s18 = smov (%p28_p4, %s3151_s18), 0  ;;  %166 = sbr.rel (%p163_p3) target bundleno = 410 (0x19a), region = 28 }
   0xa   : > { %v1476_v2 = vld [vmem:[%s3141_s1 + $0x200] sm:$0xff] (!%p163_p3)  ;;  %v2080_v3 = vpack.c.bf16 (!%p163_p3), %v1429_v1, %v1428_v0  ;;  %v1477_v4 = vld [vmem:[%s3141_s1 + $0x208] sm:$0xff] (!%p163_p3)  ;;  %v1431_v6 = vld [vmem:[%s3141_s1 + $0x98] sm:$0xff] (!%p163_p3)  ;;  %vm469_vm1 = vcmask (!%p163_p3), 1045504   ;;  %s1423_s5 = sshll.u32 (!%p163_p3), %s2480_s12, 2  ;;  %vm1274_vm2 = vcmask (!%p163_p3), 1040384  }
   0xb   : > { %v2208_v7 = vpack.c.bf16 (!%p163_p3), %v1477_v4, %v1476_v2  ;;  %v2084_v8 = vpack.c.bf16 (!%p163_p3), %v1431_v6, %v1430_v5  ;;  %v1478_v9 = vld [vmem:[%s3141_s1 + $0x210] sm:$0xff] (!%p163_p3)  ;;  %v1479_v10 = vld [vmem:[%s3141_s1 + $0x218] sm:$0xff] (!%p163_p3)  ;;  %v1432_v11 = vld [vmem:[%s3141_s1 + $0xa0] sm:$0xff] (!%p163_p3)  ;;  %p214_p7 = scmp.lt.s32.totalorder (!%p163_p3), %s1423_s5, 7 }
   0xc   : > { %2081 = vmatprep.subr.bf16.mxu1 (!%p163_p3), %v2080_v3  ;;  %v2212_v12 = vpack.c.bf16 (!%p163_p3), %v1479_v10, %v1478_v9  ;;  %v1433_v13 = vld [vmem:[%s3141_s1 + $0xa8] sm:$0xff] (!%p163_p3)  ;;  %v1480_v14 = vld [vmem:[%s3141_s1 + $0x220] sm:$0xff] (!%p163_p3)  ;;  %v1434_v18 = vld [vmem:[%s3141_s1 + $0xb0] sm:$0xff] (!%p163_p3) }
   0xd   : > { %v1481_v15 = vld [vmem:[%s3141_s1 + $0x228] sm:$0xff] (!%p163_p3)  ;;  %2209 = vmatprep.subr.bf16.mxu0 (!%p163_p3), %v2208_v7  ;;  %2083 = vmatpush3.bf16.msra.mxu1 (!%p163_p3), %v2080_v3  ;;  %v2088_v16 = vpack.c.bf16 (!%p163_p3), %v1433_v13, %v1432_v11  ;;  %v1435_v19 = vld [vmem:[%s3141_s1 + $0xb8] sm:$0xff] (!%p163_p3)  ;;  %v1482_v20 = vld [vmem:[%s3141_s1 + $0x230] sm:$0xff] (!%p163_p3) }
   0xe   : > { %2211 = vmatpush3.bf16.msra.mxu0 (!%p163_p3), %v2208_v7  ;;  %2085 = vmatprep.subr.bf16.mxu1 (!%p163_p3), %v2084_v8  ;;  %v2216_v17 = vpack.c.bf16 (!%p163_p3), %v1481_v15, %v1480_v14  ;;  %v1483_v21 = vld [vmem:[%s3141_s1 + $0x238] sm:$0xff] (!%p163_p3)  ;;  %v2092_v22 = vpack.c.bf16 (!%p163_p3), %v1435_v19, %v1434_v18  ;;  %v1436_v24 = vld [vmem:[%s3141_s1 + $0xc0] sm:$0xff] (!%p163_p3)  ;;  %v1437_v25 = vld [vmem:[%s3141_s1 + $0xc8] sm:$0xff] (!%p163_p3) }
   0xf   : > { %2213 = vmatprep.subr.bf16.mxu0 (!%p163_p3), %v2212_v12  ;;  %v2220_v23 = vpack.c.bf16 (!%p163_p3), %v1483_v21, %v1482_v20  ;;  %v1484_v27 = vld [vmem:[%s3141_s1 + $0x240] sm:$0xff] (!%p163_p3)  ;;  %v1485_v28 = vld [vmem:[%s3141_s1 + $0x248] sm:$0xff] (!%p163_p3)  ;;  %v2096_v34 = vpack.c.bf16 (!%p163_p3), %v1437_v25, %v1436_v24  ;;  %v1438_v38 = vld [vmem:[%s3141_s1 + $0xd0] sm:$0xff] (!%p163_p3) }
  0x10   : > { %s3155_s13 = smov (!%p202_p5, %s2484_s13), 1  ;;  %v2224_v37 = vpack.c.bf16 %v1485_v28, %v1484_v27  ;;  %v1439_v39 = vld [vmem:[%s3141_s1 + $0xd8] sm:$0xff]  ;;  %v1486_v41 = vld [vmem:[%s3141_s1 + $0x250] sm:$0xff]  ;;  %v1440_v46 = vld [vmem:[%s3141_s1 + $0xe0] sm:$0xff]  ;;  %s3157_s5 = smov (!%p214_p7, %s1423_s5), 7 }
  0x11   : > { %s2592_s23 = scalar_select %p204_p6, %s2480_s12, 1  ;;  %2087 = vmatpush3.bf16.msra.mxu1 %v2084_v8  ;;  %v1487_v42 = vld [vmem:[%s3141_s1 + $0x258] sm:$0xff]  ;;  %v2100_v44 = vpack.c.bf16 %v1439_v39, %v1438_v38  ;;  %v1441_v47 = vld [vmem:[%s3141_s1 + $0xe8] sm:$0xff]  ;;  %v1488_v48 = vld [vmem:[%s3141_s1 + $0x260] sm:$0xff] }
  0x12   : > { %s2417_s24 = smul.u32 24, %s3155_s13  ;;  %2215 = vmatpush3.bf16.msra.mxu0 %v2212_v12  ;;  %2089 = vmatprep.subr.bf16.mxu1 %v2088_v16  ;;  %v2228_v45 = vpack.c.bf16 %v1487_v42, %v1486_v41  ;;  %v1489_v49 = vld [vmem:[%s3141_s1 + $0x268] sm:$0xff]  ;;  %v2104_v50 = vpack.c.bf16 %v1441_v47, %v1440_v46  ;;  %v1442_v52 = vld [vmem:[%s3141_s1 + $0xf0] sm:$0xff]  ;;  %v1443_v53 = vld [vmem:[%s3141_s1 + $0xf8] sm:$0xff]  ;;  %s1424_s6 = sshll.u32 %s3155_s13, 3 }
  0x13   : > { %s2416_s25 = smul.u32 12, %s2592_s23  ;;  %2217 = vmatprep.subr.bf16.mxu0 %v2216_v17  ;;  %v2232_v51 = vpack.c.bf16 %v1489_v49, %v1488_v48  ;;  %v1490_v54 = vld [vmem:[%s3141_s1 + $0x270] sm:$0xff]  ;;  %v1491_v55 = vld [vmem:[%s3141_s1 + $0x278] sm:$0xff]  ;;  %v2108_v56 = vpack.c.bf16 %v1443_v53, %v1442_v52  ;;  %v241_v57 = vld [vmem:[%s3141_s1] sm:$0xff]  ;;  %s1426_s12 = sshll.u32 %s3155_s13, 1 }
  0x14   : > { %v2236_v58 = vpack.c.bf16 %v1491_v55, %v1490_v54  ;;  %v242_v59 = vld [vmem:[%s3141_s1 + $0x8] sm:$0xff]  ;;  %v1492_v62 = vld [vmem:[%s3141_s1 + $0x280] sm:$0xff]  ;;  %v243_v3 = vld [vmem:[%s3141_s1 + $0x10] sm:$0xff]  ;;  %s226_s20 = sadd.s32 %s1426_s12, %s2592_s23 }
  0x15   : > { %s208_s7 = sadd.s32 %s2417_s24, %s2416_s25  ;;  %2091 = vmatpush3.bf16.msra.mxu1 %v2088_v16  ;;  %v1493_v63 = vld [vmem:[%s3141_s1 + $0x288] sm:$0xff]  ;;  %v2112_v0 = vpack.c.bf16 %v242_v59, %v241_v57  ;;  %v244_v7 = vld [vmem:[%s3141_s1 + $0x18] sm:$0xff]  ;;  %v1494_v10 = vld [vmem:[%s3141_s1 + $0x290] sm:$0xff]  ;;  %s1427_s21 = sshll.u32 %s226_s20, 1 }
  0x16   : > { %s1422_s8 = sshll.u32 %s208_s7, 3  ;;  %2219 = vmatpush3.bf16.msra.mxu0 %v2216_v17  ;;  %2093 = vmatprep.subr.bf16.mxu1 %v2092_v22  ;;  %v2240_v6 = vpack.c.bf16 %v1493_v63, %v1492_v62  ;;  %v1495_v11 = vld [vmem:[%s3141_s1 + $0x298] sm:$0xff]  ;;  %v2116_v15 = vpack.c.bf16 %v244_v7, %v243_v3  ;;  %v245_v19 = vld [vmem:[%s3141_s1 + $0x20] sm:$0xff]  ;;  %v246_v20 = vld [vmem:[%s3141_s1 + $0x28] sm:$0xff]  ;;  %s217_s7 = sadd.s32 %s1424_s6, %s3157_s5 }
  0x17   : > { %s2611_s11 = scalar_lea.vmem %s3140_s0, %s1422_s8  ;;  %2221 = vmatprep.subr.bf16.mxu0 %v2220_v23  ;;  %v2244_v18 = vpack.c.bf16 %v1495_v11, %v1494_v10  ;;  %v1496_v21 = vld [vmem:[%s3141_s1 + $0x2a0] sm:$0xff]  ;;  %v2120_v27 = vpack.c.bf16 %v246_v20, %v245_v19  ;;  %v1501_v42 = vld [vmem:[%s3141_s1 + $0x2c8] sm:$0xff]  ;;  %v251_v46 = vld [vmem:[%s3141_s1 + $0x50] sm:$0xff]  ;;  %s1425_s8 = sshll.u32 %s217_s7, 3 }
  0x18   : > { %v2620_v26 = vld [vmem:[%s2611_s11] sm:$0xff]  ;;  %v2629_v29 = vld [vmem:[%s2611_s11 + $0x8] sm:$0x3]  ;;  %v2634_v32 = vld [vmem:[%s2611_s11 + $0x10] sm:$0xff]  ;;  %s219_s19 = scalar_lea.vmem %s3142_s2, %s1425_s8  ;;  %s228_s25 = scalar_lea.vmem %s3143_s3, %s1427_s21 }
  0x19   : > { %v266_v30 = vrot.slane %v2620_v26, 1  ;;  %v267_v31 = vrot.slane %v2629_v29, 1  ;;  %v2637_v33 = vld [vmem:[%s2611_s11 + $0x18] sm:$0x3]  ;;  %v269_v35 = vrot.slane %v2634_v32, 1  ;;  %2095 = vmatpush3.bf16.msra.mxu1 %v2092_v22  ;;  %v2686_v60 = vld [vmem:[%s2611_s11 + $0x20] sm:$0xff] }
  0x1a   : > { %v270_v36 = vrot.slane %v2637_v33, 1  ;;  %2223 = vmatpush3.bf16.msra.mxu0 %v2220_v23  ;;  %2097 = vmatprep.subr.bf16.mxu1 %v2096_v34  ;;  %v2689_v61 = vld [vmem:[%s2611_s11 + $0x28] sm:$0x3]  ;;  %v272_v1 = vrot.slane %v2686_v60, 1  ;;  %v2703_v4 = vld [vmem:[%s2611_s11 + $0x30] sm:$0xff]  ;;  %v2712_v8 = vld [vmem:[%s2611_s11 + $0x40] sm:$0xff] }
  0x1b   : > { %v268_v40 = vsel %vm265_vm0, %v266_v30, %v267_v31  ;;  %2225 = vmatprep.subr.bf16.mxu0 %v2224_v37  ;;  %v273_v2 = vrot.slane %v2689_v61, 1  ;;  %v2706_v5 = vld [vmem:[%s2611_s11 + $0x38] sm:$0x3]  ;;  %v2715_v9 = vld [vmem:[%s2611_s11 + $0x48] sm:$0x3]  ;;  %v275_v12 = vrot.slane %v2703_v4, 1 }
  0x1c   : > { %1770 = vmatprep.mubr.f32.mxu1 %v268_v40  ;;  %v271_v43 = vsel %vm265_vm0, %v269_v35, %v270_v36  ;;  %v276_v13 = vrot.slane %v2706_v5, 1  ;;  %v700_v16 = vrot.slane %v2712_v8, 1  ;;  %v701_v17 = vrot.slane %v2715_v9, 1  ;;  %v1497_v22 = vld [vmem:[%s3141_s1 + $0x2a8] sm:$0xff]  ;;  %v247_v31 = vld [vmem:[%s3141_s1 + $0x30] sm:$0xff]  ;;  %v1499_v35 = vld [vmem:[%s3141_s1 + $0x2b8] sm:$0xff] }
  0x1d   : > { %1922 = vmatprep.mubr.f32.mxu0 %v271_v43  ;;  %2099 = vmatpush3.bf16.msra.mxu1 %v2096_v34  ;;  %v2726_v14 = vsel %vm265_vm0, %v272_v1, %v273_v2  ;;  %v473_v24 = vrot.slane %v2634_v32, 2  ;;  %v474_v25 = vrot.slane %v2637_v33, 2  ;;  %v2248_v30 = vpack.c.bf16 %v1497_v22, %v1496_v21  ;;  %v248_v34 = vld [vmem:[%s3141_s1 + $0x38] sm:$0xff]  ;;  %v1498_v33 = vld [vmem:[%s3141_s1 + $0x2b0] sm:$0xff]  ;;  %v249_v39 = vld [vmem:[%s3141_s1 + $0x40] sm:$0xff] }
  0x1e   : > { %2227 = vmatpush3.bf16.msra.mxu0 %v2224_v37  ;;  %2101 = vmatprep.subr.bf16.mxu1 %v2100_v44  ;;  %v2744_v23 = vsel %vm265_vm0, %v275_v12, %v276_v13  ;;  %v2749_v28 = vsel %vm265_vm0, %v700_v16, %v701_v17  ;;  %v2124_v37 = vpack.c.bf16 %v248_v34, %v247_v31  ;;  %v250_v40 = vld [vmem:[%s3141_s1 + $0x48] sm:$0xff]  ;;  %v1500_v41 = vld [vmem:[%s3141_s1 + $0x2c0] sm:$0xff]  ;;  %v252_v47 = vld [vmem:[%s3141_s1 + $0x58] sm:$0xff]  ;;  %v476_v20 = vrot.slane %v2686_v60, 2 }
  0x1f   : > { %2229 = vmatprep.subr.bf16.mxu0 %v2228_v45  ;;  %v2768_v36 = vsel %vm469_vm1, %v473_v24, %v474_v25  ;;  %v2252_v38 = vpack.c.bf16 %v1499_v35, %v1498_v33  ;;  %v240_v52 = vld [vmem:[%s2611_s11 + $0x58] sm:$0x3]  ;;  %v2132_v55 = vpack.c.bf16 %v252_v47, %v251_v46  ;;  %v253_v57 = vld [vmem:[%s3141_s1 + $0x60] sm:$0xff]  ;;  %v255_v3 = vld [vmem:[%s3141_s1 + $0x70] sm:$0xff]  ;;  %v810_v33 = vrot.slane %v2712_v8, 2 }
  0x20   : > { %v1029_v53 = vrot.slane %v240_v52, 1  ;;  %v1139_v54 = vrot.slane %v240_v52, 2  ;;  %v1504_v63 = vld [vmem:[%s3141_s1 + $0x2e0] sm:$0xff]  ;;  %v1506_v7 = vld [vmem:[%s3141_s1 + $0x2f0] sm:$0xff]  ;;  %v1507_v10 = vld [vmem:[%s3141_s1 + $0x2f8] sm:$0xff]  ;;  %v811_v35 = vrot.slane %v2715_v9, 2 }
  0x21   : > { %2103 = vmatpush3.bf16.msra.mxu1 %v2100_v44  ;;  %v2785_v44 = vld [vmem:[%s2611_s11 + $0x50] sm:$0xff]  ;;  %v2268_v12 = vpack.c.bf16 %v1507_v10, %v1506_v7  ;;  %v1444_v13 = vld [vmem:[%s3141_s1 + $0x100] sm:$0xff]  ;;  %v1509_v17 = vld [vmem:[%s3141_s1 + $0x308] sm:$0xff] }
  0x22   : > { %2231 = vmatpush3.bf16.msra.mxu0 %v2228_v45  ;;  %2105 = vmatprep.subr.bf16.mxu1 %v2104_v50  ;;  %v2256_v45 = vpack.c.bf16 %v1501_v42, %v1500_v41  ;;  %v1028_v48 = vrot.slane %v2785_v44, 1  ;;  %v1138_v49 = vrot.slane %v2785_v44, 2  ;;  %v1508_v16 = vld [vmem:[%s3141_s1 + $0x300] sm:$0xff]  ;;  %v1446_v22 = vld [vmem:[%s3141_s1 + $0x110] sm:$0xff]  ;;  %v1447_v24 = vld [vmem:[%s3141_s1 + $0x118] sm:$0xff]  ;;  %v471_v41 = vrot.slane %v2629_v29, 2 }
  0x23   : > { %2233 = vmatprep.subr.bf16.mxu0 %v2232_v51  ;;  %v2272_v21 = vpack.c.bf16 %v1509_v17, %v1508_v16  ;;  %v1510_v25 = vld [vmem:[%s3141_s1 + $0x310] sm:$0xff]  ;;  %v2148_v34 = vpack.c.bf16 %v1447_v24, %v1446_v22  ;;  %v1513_v9 = vld [vmem:[%s3141_s1 + $0x328] sm:$0xff]  ;;  %v1451_v29 = vld [vmem:[%s3141_s1 + $0x138] sm:$0xff] }
  0x24   : > { %v2809_v59 = vsel %vm265_vm0, %v1028_v48, %v1029_v53  ;;  %v2812_v62 = vsel %vm469_vm1, %v1138_v49, %v1139_v54  ;;  %v1514_v47 = vld [vmem:[%s3141_s1 + $0x330] sm:$0xff]  ;;  %v1515_v48 = vld [vmem:[%s3141_s1 + $0x338] sm:$0xff]  ;;  %v1452_v52 = vld [vmem:[%s3141_s1 + $0x140] sm:$0xff] }
  0x25   : > { %2107 = vmatpush3.bf16.msra.mxu1 %v2104_v50  ;;  %v1502_v50 = vld [vmem:[%s3141_s1 + $0x2d0] sm:$0xff]  ;;  %v1453_v53 = vld [vmem:[%s3141_s1 + $0x148] sm:$0xff]  ;;  %v1516_v54 = vld [vmem:[%s3141_s1 + $0x340] sm:$0xff] }
  0x26   : > { %2235 = vmatpush3.bf16.msra.mxu0 %v2232_v51  ;;  %2109 = vmatprep.subr.bf16.mxu1 %v2108_v56  ;;  %v1503_v51 = vld [vmem:[%s3141_s1 + $0x2d8] sm:$0xff]  ;;  %v1457_v7 = vld [vmem:[%s3141_s1 + $0x168] sm:$0xff]  ;;  %v1520_v10 = vld [vmem:[%s3141_s1 + $0x360] sm:$0xff] }
  0x27   : > { %2237 = vmatprep.subr.bf16.mxu0 %v2236_v58  ;;  %v1459_v16 = vld [vmem:[%s3141_s1 + $0x178] sm:$0xff]  ;;  %v1522_v17 = vld [vmem:[%s3141_s1 + $0x370] sm:$0xff]  ;;  %v1461_v22 = vld [vmem:[%s3141_s1 + $0x188] sm:$0xff] }
  0x28   : > { %v1524_v24 = vld [vmem:[%s3141_s1 + $0x380] sm:$0xff] }
  0x29   : > { %2111 = vmatpush3.bf16.msra.mxu1 %v2108_v56  ;;  %v2260_v56 = vpack.c.bf16 %v1503_v51, %v1502_v50  ;;  %v2284_v51 = vpack.c.bf16 %v1515_v48, %v1514_v47 }
  0x2a   : > { %2239 = vmatpush3.bf16.msra.mxu0 %v2236_v58  ;;  %2113 = vmatprep.subr.bf16.mxu1 %v2112_v0  ;;  %v254_v58 = vld [vmem:[%s3141_s1 + $0x68] sm:$0xff] }
  0x2b   : > { %2241 = vmatprep.subr.bf16.mxu0 %v2240_v6  ;;  %v2136_v1 = vpack.c.bf16 %v254_v58, %v253_v57  ;;  %v1454_v58 = vld [vmem:[%s3141_s1 + $0x150] sm:$0xff] }
  0x2c   : > { %1771 = vmatmul.mubr.f32.vlgmr.msra.gmra.mrb[0].mxu1 %v271_v43  ;;  %v2128_v43 = vpack.c.bf16 %v250_v40, %v249_v39  ;;  %v1512_v39 = vld [vmem:[%s3141_s1 + $0x320] sm:$0xff]  ;;  %v470_v40 = vrot.slane %v2620_v26, 2 }
  0x2d   : > { %2115 = vmatpush3.bf16.msra.mxu1 %v2112_v0  ;;  %1923 = vmatmul.mubr.f32.vlgmr.msra.gmra.mrb[0].mxu0 %v2726_v14  ;;  %v1505_v0 = vld [vmem:[%s3141_s1 + $0x2e8] sm:$0xff]  ;;  %v2280_v46 = vpack.c.bf16 %v1513_v9, %v1512_v39  ;;  %v1528_v9 = vld [vmem:[%s3141_s1 + $0x3a0] sm:$0xff] }
  0x2e   : > { %2243 = vmatpush3.bf16.msra.mxu0 %v2240_v6  ;;  %2117 = vmatprep.subr.bf16.mxu1 %v2116_v15  ;;  %v2264_v2 = vpack.c.bf16 %v1505_v0, %v1504_v63  ;;  %v256_v6 = vld [vmem:[%s3141_s1 + $0x78] sm:$0xff]  ;;  %v472_v49 = vsel %vm469_vm1, %v470_v40, %v471_v41  ;;  %v1518_v0 = vld [vmem:[%s3141_s1 + $0x350] sm:$0xff]  ;;  %v1465_v39 = vld [vmem:[%s3141_s1 + $0x1a8] sm:$0xff] }
  0x2f   : > { %2245 = vmatprep.subr.bf16.mxu0 %v2244_v18  ;;  %1773 = vmatprep.mubr.f32.mxu1 %v2726_v14  ;;  %v2140_v11 = vpack.c.bf16 %v256_v6, %v255_v3  ;;  %v1455_v63 = vld [vmem:[%s3141_s1 + $0x158] sm:$0xff]  ;;  %v1456_v6 = vld [vmem:[%s3141_s1 + $0x160] sm:$0xff]  ;;  %v1529_v40 = vld [vmem:[%s3141_s1 + $0x3a8] sm:$0xff] }
  0x30   : > { %1925 = vmatprep.mubr.f32.mxu0 %v2744_v23  ;;  %1774 = vmatmul.mubr.f32.gmra.mrb[2].mxu1 %v2744_v23 }
  0x31   : > { %2119 = vmatpush3.bf16.msra.mxu1 %v2116_v15  ;;  %1926 = vmatmul.mubr.f32.gmra.mrb[2].mxu0 %v2749_v28  ;;  %v1445_v15 = vld [vmem:[%s3141_s1 + $0x108] sm:$0xff] }
  0x32   : > { %2247 = vmatpush3.bf16.msra.mxu0 %v2244_v18  ;;  %2121 = vmatprep.subr.bf16.mxu1 %v2120_v27  ;;  %v477_v18 = vrot.slane %v2689_v61, 2  ;;  %v2144_v19 = vpack.c.bf16 %v1445_v15, %v1444_v13  ;;  %v1511_v61 = vld [vmem:[%s3141_s1 + $0x318] sm:$0xff]  ;;  %v1458_v15 = vld [vmem:[%s3141_s1 + $0x170] sm:$0xff] }
  0x33   : > { %2249 = vmatprep.subr.bf16.mxu0 %v2248_v30  ;;  %1808 = vmatprep.mubr.f32.mxu1 %v2620_v26  ;;  %v1450_v26 = vld [vmem:[%s3141_s1 + $0x130] sm:$0xff] }
  0x34   : > { %1960 = vmatprep.mubr.f32.mxu0 %v2768_v36  ;;  %v2861_v31 = vsel %vm469_vm1, %v476_v20, %v477_v18  ;;  %v2156_v50 = vpack.c.bf16 %v1451_v29, %v1450_v26  ;;  %v1523_v18 = vld [vmem:[%s3141_s1 + $0x378] sm:$0xff]  ;;  %v1530_v26 = vld [vmem:[%s3141_s1 + $0x3b0] sm:$0xff] }
  0x35   : > { %2123 = vmatpush3.bf16.msra.mxu1 %v2120_v27  ;;  %v479_v27 = vrot.slane %v2703_v4, 2  ;;  %v2300_v20 = vpack.c.bf16 %v1523_v18, %v1522_v17  ;;  %v1531_v29 = vld [vmem:[%s3141_s1 + $0x3b8] sm:$0xff]  ;;  %v1542_v18 = vld [vmem:[%s3141_s1 + $0x410] sm:$0xff] }
  0x36   : > { %2251 = vmatpush3.bf16.msra.mxu0 %v2248_v30  ;;  %2125 = vmatprep.subr.bf16.mxu1 %v2124_v37  ;;  %v480_v30 = vrot.slane %v2706_v5, 2  ;;  %v1449_v5 = vld [vmem:[%s3141_s1 + $0x128] sm:$0xff]  ;;  %v2316_v48 = vpack.c.bf16 %v1531_v29, %v1530_v26 }
  0x37   : > { %2253 = vmatprep.subr.bf16.mxu0 %v2252_v38 }
  0x38   : > { %v2882_v42 = vsel %vm469_vm1, %v479_v27, %v480_v30  ;;  %v1462_v30 = vld [vmem:[%s3141_s1 + $0x190] sm:$0xff] }
  0x39   : > { %2127 = vmatpush3.bf16.msra.mxu1 %v2124_v37  ;;  %v2276_v37 = vpack.c.bf16 %v1511_v61, %v1510_v25  ;;  %v1525_v25 = vld [vmem:[%s3141_s1 + $0x388] sm:$0xff] }
  0x3a   : > { %2255 = vmatpush3.bf16.msra.mxu0 %v2252_v38  ;;  %2129 = vmatprep.subr.bf16.mxu1 %v2128_v43  ;;  %v1448_v38 = vld [vmem:[%s3141_s1 + $0x120] sm:$0xff]  ;;  %v2304_v27 = vpack.c.bf16 %v1525_v25, %v1524_v24  ;;  %v1546_v25 = vld [vmem:[%s3141_s1 + $0x430] sm:$0xff] }
  0x3b   : > { %2257 = vmatprep.subr.bf16.mxu0 %v2256_v45 }
  0x3d   : > { %2131 = vmatpush3.bf16.msra.mxu1 %v2128_v43  ;;  %v2152_v43 = vpack.c.bf16 %v1449_v5, %v1448_v38  ;;  %v1464_v5 = vld [vmem:[%s3141_s1 + $0x1a0] sm:$0xff] }
  0x3e   : > { %2259 = vmatpush3.bf16.msra.mxu0 %v2256_v45  ;;  %2133 = vmatprep.subr.bf16.mxu1 %v2132_v55  ;;  %v2885_v45 = vsel %vm469_vm1, %v810_v33, %v811_v35  ;;  %v1526_v33 = vld [vmem:[%s3141_s1 + $0x390] sm:$0xff]  ;;  %v1527_v35 = vld [vmem:[%s3141_s1 + $0x398] sm:$0xff]  ;;  %v2184_v41 = vpack.c.bf16 %v1465_v39, %v1464_v5 }
  0x3f   : > { %2261 = vmatprep.subr.bf16.mxu0 %v2260_v56  ;;  %v2308_v38 = vpack.c.bf16 %v1527_v35, %v1526_v33  ;;  %v1555_v33 = vld [vmem:[%s3141_s1 + $0x478] sm:$0xff] }
  0x41   : > { %2135 = vmatpush3.bf16.msra.mxu1 %v2132_v55  ;;  %v1517_v55 = vld [vmem:[%s3141_s1 + $0x348] sm:$0xff] }
  0x42   : > { %2263 = vmatpush3.bf16.msra.mxu0 %v2260_v56  ;;  %2137 = vmatprep.subr.bf16.mxu1 %v2136_v1  ;;  %v2160_v56 = vpack.c.bf16 %v1453_v53, %v1452_v52  ;;  %v2288_v57 = vpack.c.bf16 %v1517_v55, %v1516_v54  ;;  %v1471_v54 = vld [vmem:[%s3141_s1 + $0x1d8] sm:$0xff]  ;;  %v1534_v55 = vld [vmem:[%s3141_s1 + $0x3d0] sm:$0xff] }
  0x43   : > { %2265 = vmatprep.subr.bf16.mxu0 %v2264_v2 }
  0x45   : > { %2139 = vmatpush3.bf16.msra.mxu1 %v2136_v1  ;;  %v1519_v1 = vld [vmem:[%s3141_s1 + $0x358] sm:$0xff] }
  0x46   : > { %2267 = vmatpush3.bf16.msra.mxu0 %v2264_v2  ;;  %2141 = vmatprep.subr.bf16.mxu1 %v2140_v11  ;;  %v2164_v2 = vpack.c.bf16 %v1455_v63, %v1454_v58  ;;  %v2292_v3 = vpack.c.bf16 %v1519_v1, %v1518_v0  ;;  %v1472_v58 = vld [vmem:[%s3141_s1 + $0x1e0] sm:$0xff]  ;;  %v1473_v63 = vld [vmem:[%s3141_s1 + $0x1e8] sm:$0xff] }
  0x47   : > { %2269 = vmatprep.subr.bf16.mxu0 %v2268_v12  ;;  %v1536_v0 = vld [vmem:[%s3141_s1 + $0x3e0] sm:$0xff]  ;;  %v1537_v1 = vld [vmem:[%s3141_s1 + $0x3e8] sm:$0xff] }
  0x49   : > { %2143 = vmatpush3.bf16.msra.mxu1 %v2140_v11  ;;  %v1521_v11 = vld [vmem:[%s3141_s1 + $0x368] sm:$0xff] }
  0x4a   : > { %2271 = vmatpush3.bf16.msra.mxu0 %v2268_v12  ;;  %2145 = vmatprep.subr.bf16.mxu1 %v2144_v19  ;;  %v2168_v12 = vpack.c.bf16 %v1457_v7, %v1456_v6  ;;  %v2296_v13 = vpack.c.bf16 %v1521_v11, %v1520_v10  ;;  %v1474_v6 = vld [vmem:[%s3141_s1 + $0x1f0] sm:$0xff]  ;;  %v1475_v7 = vld [vmem:[%s3141_s1 + $0x1f8] sm:$0xff] }
  0x4b   : > { %2273 = vmatprep.subr.bf16.mxu0 %v2272_v21  ;;  %v1538_v10 = vld [vmem:[%s3141_s1 + $0x3f0] sm:$0xff]  ;;  %v1539_v11 = vld [vmem:[%s3141_s1 + $0x3f8] sm:$0xff] }
  0x4c   : > { %1809 = vmatmul.mubr.f32.vlgmr.msra.gmra.mrb[0].mxu1 %v2634_v32 }
  0x4d   : > { %2147 = vmatpush3.bf16.msra.mxu1 %v2144_v19  ;;  %1961 = vmatmul.mubr.f32.vlgmr.msra.gmra.mrb[0].mxu0 %v2861_v31  ;;  %v2172_v19 = vpack.c.bf16 %v1459_v16, %v1458_v15  ;;  %v1540_v15 = vld [vmem:[%s3141_s1 + $0x400] sm:$0xff]  ;;  %v1541_v16 = vld [vmem:[%s3141_s1 + $0x408] sm:$0xff] }
  0x4e   : > { %2275 = vmatpush3.bf16.msra.mxu0 %v2272_v21  ;;  %2149 = vmatprep.subr.bf16.mxu1 %v2148_v34  ;;  %v1460_v21 = vld [vmem:[%s3141_s1 + $0x180] sm:$0xff]  ;;  %v2336_v17 = vpack.c.bf16 %v1541_v16, %v1540_v15 }
  0x4f   : > { %2277 = vmatprep.subr.bf16.mxu0 %v2276_v37  ;;  %1811 = vmatprep.mubr.f32.mxu1 %v2686_v60  ;;  %v2176_v61 = vpack.c.bf16 %v1461_v22, %v1460_v21  ;;  %v1544_v21 = vld [vmem:[%s3141_s1 + $0x420] sm:$0xff]  ;;  %v1545_v22 = vld [vmem:[%s3141_s1 + $0x428] sm:$0xff] }
  0x50   : > { %1963 = vmatprep.mubr.f32.mxu0 %v2882_v42  ;;  %1812 = vmatmul.mubr.f32.gmra.mrb[2].mxu1 %v2703_v4  ;;  %v2344_v24 = vpack.c.bf16 %v1545_v22, %v1544_v21 }
  0x51   : > { %2151 = vmatpush3.bf16.msra.mxu1 %v2148_v34  ;;  %1964 = vmatmul.mubr.f32.gmra.mrb[2].mxu0 %v2885_v45  ;;  %v1463_v34 = vld [vmem:[%s3141_s1 + $0x198] sm:$0xff] }
  0x52   : > { %2279 = vmatpush3.bf16.msra.mxu0 %v2276_v37  ;;  %2153 = vmatprep.subr.bf16.mxu1 %v2152_v43  ;;  %v2180_v37 = vpack.c.bf16 %v1463_v34, %v1462_v30  ;;  %v1554_v34 = vld [vmem:[%s3141_s1 + $0x470] sm:$0xff] }
  0x53   : > { %2281 = vmatprep.subr.bf16.mxu0 %v2280_v46  ;;  %1846 = vmatprep.mubr.f32.mxu1 %v472_v49  ;;  %v1468_v49 = vld [vmem:[%s3141_s1 + $0x1c0] sm:$0xff]  ;;  %v2364_v35 = vpack.c.bf16 %v1555_v33, %v1554_v34 }
  0x54   : > { %1998 = vmatprep.mubr.f32.mxu0 %v2686_v60 }
  0x55   : > { %2155 = vmatpush3.bf16.msra.mxu1 %v2152_v43  ;;  %v2312_v43 = vpack.c.bf16 %v1529_v40, %v1528_v9 }
  0x56   : > { %2283 = vmatpush3.bf16.msra.mxu0 %v2280_v46  ;;  %2157 = vmatprep.subr.bf16.mxu1 %v2156_v50  ;;  %v1467_v46 = vld [vmem:[%s3141_s1 + $0x1b8] sm:$0xff] }
  0x57   : > { %2285 = vmatprep.subr.bf16.mxu0 %v2284_v51 }
  0x59   : > { %2159 = vmatpush3.bf16.msra.mxu1 %v2156_v50  ;;  %v1469_v50 = vld [vmem:[%s3141_s1 + $0x1c8] sm:$0xff] }
  0x5a   : > { %2287 = vmatpush3.bf16.msra.mxu0 %v2284_v51  ;;  %2161 = vmatprep.subr.bf16.mxu1 %v2160_v56  ;;  %v1532_v51 = vld [vmem:[%s3141_s1 + $0x3c0] sm:$0xff]  ;;  %v2192_v52 = vpack.c.bf16 %v1469_v50, %v1468_v49 }
  0x5b   : > { %2289 = vmatprep.subr.bf16.mxu0 %v2288_v57 }
  0x5d   : > { %2163 = vmatpush3.bf16.msra.mxu1 %v2160_v56 }
  0x5e   : > { %2291 = vmatpush3.bf16.msra.mxu0 %v2288_v57  ;;  %2165 = vmatprep.subr.bf16.mxu1 %v2164_v2 }
  0x5f   : > { %2293 = vmatprep.subr.bf16.mxu0 %v2292_v3 }
  0x61   : > { %2167 = vmatpush3.bf16.msra.mxu1 %v2164_v2  ;;  %v2200_v2 = vpack.c.bf16 %v1473_v63, %v1472_v58 }
  0x62   : > { %2295 = vmatpush3.bf16.msra.mxu0 %v2292_v3  ;;  %2169 = vmatprep.subr.bf16.mxu1 %v2168_v12  ;;  %v2328_v3 = vpack.c.bf16 %v1537_v1, %v1536_v0 }
  0x63   : > { %2297 = vmatprep.subr.bf16.mxu0 %v2296_v13 }
  0x65   : > { %2171 = vmatpush3.bf16.msra.mxu1 %v2168_v12  ;;  %v2204_v12 = vpack.c.bf16 %v1475_v7, %v1474_v6 }
  0x66   : > { %2299 = vmatpush3.bf16.msra.mxu0 %v2296_v13  ;;  %2173 = vmatprep.subr.bf16.mxu1 %v2172_v19  ;;  %v2332_v13 = vpack.c.bf16 %v1539_v11, %v1538_v10 }
  0x67   : > { %2301 = vmatprep.subr.bf16.mxu0 %v2300_v20 }
  0x69   : > { %2175 = vmatpush3.bf16.msra.mxu1 %v2172_v19  ;;  %v1543_v19 = vld [vmem:[%s3141_s1 + $0x418] sm:$0xff] }
  0x6a   : > { %2303 = vmatpush3.bf16.msra.mxu0 %v2300_v20  ;;  %2177 = vmatprep.subr.bf16.mxu1 %v2176_v61  ;;  %v2340_v20 = vpack.c.bf16 %v1543_v19, %v1542_v18 }
  0x6b   : > { %2305 = vmatprep.subr.bf16.mxu0 %v2304_v27 }
  0x6c   : > { %1847 = vmatmul.mubr.f32.vlgmr.msra.gmra.mrb[0].mxu1 %v2768_v36  ;;  %v1466_v36 = vld [vmem:[%s3141_s1 + $0x1b0] sm:$0xff] }
  0x6d   : > { %2179 = vmatpush3.bf16.msra.mxu1 %v2176_v61  ;;  %1999 = vmatmul.mubr.f32.vlgmr.msra.gmra.mrb[0].mxu0 %v2703_v4  ;;  %v2188_v47 = vpack.c.bf16 %v1467_v46, %v1466_v36  ;;  %v1547_v61 = vld [vmem:[%s3141_s1 + $0x438] sm:$0xff] }
  0x6e   : > { %2307 = vmatpush3.bf16.msra.mxu0 %v2304_v27  ;;  %2181 = vmatprep.subr.bf16.mxu1 %v2180_v37 }
  0x6f   : > { %2309 = vmatprep.subr.bf16.mxu0 %v2308_v38  ;;  %1849 = vmatprep.mubr.f32.mxu1 %v2861_v31 }
  0x70   : > { %2001 = vmatprep.mubr.f32.mxu0 %v2712_v8  ;;  %1850 = vmatmul.mubr.f32.gmra.mrb[2].mxu1 %v2882_v42 }
  0x71   : > { %2183 = vmatpush3.bf16.msra.mxu1 %v2180_v37  ;;  %2002 = vmatmul.mubr.f32.gmra.mrb[2].mxu0 %v2785_v44  ;;  %v1533_v44 = vld [vmem:[%s3141_s1 + $0x3c8] sm:$0xff] }
  0x72   : > { %2311 = vmatpush3.bf16.msra.mxu0 %v2308_v38  ;;  %2185 = vmatprep.subr.bf16.mxu1 %v2184_v41  ;;  %v2320_v53 = vpack.c.bf16 %v1533_v44, %v1532_v51 }
  0x73   : > { %2313 = vmatprep.subr.bf16.mxu0 %v2312_v43  ;;  %1884 = vmatprep.mubr.f32.mxu1 %v2634_v32  ;;  %v1470_v32 = vld [vmem:[%s3141_s1 + $0x1d0] sm:$0xff] }
  0x74   : > { %2036 = vmatprep.mubr.f32.mxu0 %v2726_v14  ;;  %v1535_v14 = vld [vmem:[%s3141_s1 + $0x3d8] sm:$0xff]  ;;  %v2196_v56 = vpack.c.bf16 %v1471_v54, %v1470_v32 }
  0x75   : > { %2187 = vmatpush3.bf16.msra.mxu1 %v2184_v41  ;;  %v2324_v57 = vpack.c.bf16 %v1535_v14, %v1534_v55 }
  0x76   : > { %2315 = vmatpush3.bf16.msra.mxu0 %v2312_v43  ;;  %2189 = vmatprep.subr.bf16.mxu1 %v2188_v47 }
  0x77   : > { %2317 = vmatprep.subr.bf16.mxu0 %v2316_v48 }
  0x79   : > { %2191 = vmatpush3.bf16.msra.mxu1 %v2188_v47 }
  0x7a   : > { %2319 = vmatpush3.bf16.msra.mxu0 %v2316_v48  ;;  %2193 = vmatprep.subr.bf16.mxu1 %v2192_v52 }
  0x7b   : > { %2321 = vmatprep.subr.bf16.mxu0 %v2320_v53 }
  0x7d   : > { %2195 = vmatpush3.bf16.msra.mxu1 %v2192_v52 }
  0x7e   : > { %2323 = vmatpush3.bf16.msra.mxu0 %v2320_v53  ;;  %2197 = vmatprep.subr.bf16.mxu1 %v2196_v56 }
  0x7f   : > { %2325 = vmatprep.subr.bf16.mxu0 %v2324_v57 }
  0x81   : > { %2199 = vmatpush3.bf16.msra.mxu1 %v2196_v56 }
  0x82   : > { %2327 = vmatpush3.bf16.msra.mxu0 %v2324_v57  ;;  %2201 = vmatprep.subr.bf16.mxu1 %v2200_v2 }
  0x83   : > { %2329 = vmatprep.subr.bf16.mxu0 %v2328_v3 }
  0x85   : > { %2203 = vmatpush3.bf16.msra.mxu1 %v2200_v2 }
  0x86   : > { %2331 = vmatpush3.bf16.msra.mxu0 %v2328_v3  ;;  %2205 = vmatprep.subr.bf16.mxu1 %v2204_v12 }
  0x87   : > { %2333 = vmatprep.subr.bf16.mxu0 %v2332_v13 }
  0x89   : > { %2207 = vmatpush3.bf16.msra.mxu1 %v2204_v12 }
  0x8a   : > { %2335 = vmatpush3.bf16.msra.mxu0 %v2332_v13  ;;  %2368 = vmatprep.subr.bf16.mxu1 %v2336_v17 }
  0x8b   : > { %2337 = vmatprep.subr.bf16.mxu0 %v2336_v17 }
  0x8c   : > { %1885 = vmatmul.mubr.f32.vlgmr.msra.gmra.mrb[0].mxu1 %v2686_v60  ;;  %v2348_v60 = vpack.c.bf16 %v1547_v61, %v1546_v25 }
  0x8d   : > { %2037 = vmatmul.mubr.f32.vlgmr.msra.gmra.mrb[0].mxu0 %v2744_v23  ;;  %2376 = vmatpush3.bf16.msra.mxu1 %v2336_v17  ;;  %v1549_v23 = vld [vmem:[%s3141_s1 + $0x448] sm:$0xff] }
  0x8e   : > { %2339 = vmatpush3.bf16.msra.mxu0 %v2336_v17  ;;  %1887 = vmatprep.mubr.f32.mxu1 %v2703_v4  ;;  %v1548_v4 = vld [vmem:[%s3141_s1 + $0x440] sm:$0xff] }
  0x8f   : > { %2039 = vmatprep.mubr.f32.mxu0 %v2749_v28  ;;  %2341 = vmatprep.subr.bf16.mxu0 %v2340_v20  ;;  %v1550_v28 = vld [vmem:[%s3141_s1 + $0x450] sm:$0xff] }
  0x90   : > { %1888 = vmatmul.mubr.f32.gmra.mrb[2].mxu1 %v2712_v8  ;;  %2369 = vmatprep.subr.bf16.mxu1 %v2340_v20  ;;  %v2352_v8 = vpack.c.bf16 %v1549_v23, %v1548_v4 }
  0x91   : > { %2040 = vmatmul.mubr.f32.gmra.mrb[2].mxu0 %v2809_v59  ;;  %2377 = vmatpush3.bf16.msra.mxu1 %v2340_v20  ;;  %v1551_v59 = vld [vmem:[%s3141_s1 + $0x458] sm:$0xff] }
  0x92   : > { %2343 = vmatpush3.bf16.msra.mxu0 %v2340_v20  ;;  %2370 = vmatprep.subr.bf16.mxu1 %v2344_v24  ;;  %v2356_v27 = vpack.c.bf16 %v1551_v59, %v1550_v28 }
  0x93   : > { %2345 = vmatprep.subr.bf16.mxu0 %v2344_v24  ;;  %2074 = vmatprep.mubr.f32.mxu0 %v2861_v31  ;;  %v1552_v31 = vld [vmem:[%s3141_s1 + $0x460] sm:$0xff] }
  0x94   : > { %2077 = vmatprep.mubr.f32.mxu1 %v2885_v45  ;;  %v1553_v45 = vld [vmem:[%s3141_s1 + $0x468] sm:$0xff] }
  0x95   : > { %2378 = vmatpush3.bf16.msra.mxu1 %v2344_v24  ;;  %v2360_v30 = vpack.c.bf16 %v1553_v45, %v1552_v31 }
  0x96   : > { %2347 = vmatpush3.bf16.msra.mxu0 %v2344_v24  ;;  %2371 = vmatprep.subr.bf16.mxu1 %v2348_v60 }
  0x97   : > { %2349 = vmatprep.subr.bf16.mxu0 %v2348_v60 }
  0x99   : > { %2379 = vmatpush3.bf16.msra.mxu1 %v2348_v60 }
  0x9a   : > { %2351 = vmatpush3.bf16.msra.mxu0 %v2348_v60  ;;  %2372 = vmatprep.subr.bf16.mxu1 %v2352_v8 }
  0x9b   : > { %2353 = vmatprep.subr.bf16.mxu0 %v2352_v8 }
  0x9d   : > { %2380 = vmatpush3.bf16.msra.mxu1 %v2352_v8 }
  0x9e   : > { %2355 = vmatpush3.bf16.msra.mxu0 %v2352_v8  ;;  %2373 = vmatprep.subr.bf16.mxu1 %v2356_v27 }
  0x9f   : > { %2357 = vmatprep.subr.bf16.mxu0 %v2356_v27 }
  0xa1   : > { %2381 = vmatpush3.bf16.msra.mxu1 %v2356_v27 }
  0xa2   : > { %2359 = vmatpush3.bf16.msra.mxu0 %v2356_v27  ;;  %2374 = vmatprep.subr.bf16.mxu1 %v2360_v30 }
  0xa3   : > { %2361 = vmatprep.subr.bf16.mxu0 %v2360_v30 }
  0xa5   : > { %2382 = vmatpush3.bf16.msra.mxu1 %v2360_v30 }
  0xa6   : > { %2363 = vmatpush3.bf16.msra.mxu0 %v2360_v30  ;;  %2375 = vmatprep.subr.bf16.mxu1 %v2364_v35 }
  0xa7   : > { %2365 = vmatprep.subr.bf16.mxu0 %v2364_v35 }
  0xa9   : > { %2383 = vmatpush3.bf16.msra.mxu1 %v2364_v35 }
  0xaa   : > { %2367 = vmatpush3.bf16.msra.mxu0 %v2364_v35 }
  0xac   : > { %2078 = vmatmul.mubr.f32.vlgmr.msra.gmra.mrb[4].mxu1 %v2812_v62 }
  0xad   : > { %2075 = vmatmul.mubr.f32.vlgmr.msra.gmra.mrb[0].mxu0 %v2882_v42 }
 0x15f   : > { %v1886_v37 = vpop.f32.mrb[0].mxu1 }
 0x160   : > { %v675_v38 = vpop.f32.mrb[1].mxu1 }
 0x163   : > { %v1889_v5 = vpop.f32.mrb[2].mxu1 }
 0x164   : > { %v2041_v39 = vpop.f32.mrb[2].mxu0  ;;  %v685_v9 = vpop.f32.mrb[3].mxu1 }
 0x165   : > { %v2386_v40 = vadd.f32 %v2041_v39, %v1889_v5  ;;  %v1125_v41 = vpop.f32.mrb[3].mxu0 }
 0x166   : > { %v2388_v43 = vadd.f32 %v1125_v41, %v685_v9 }
 0x17f   : > { %v2079_v62 = vpop.f32.mrb[4].mxu1 }
 0x180   : > { %v2076_v42 = vpop.f32.mrb[0].mxu0  ;;  %v2387_v36 = vadd.f32 %v2386_v40, %v2079_v62  ;;  %v1235_v46 = vpop.f32.mrb[5].mxu1 }
 0x181   : > { %v2384_v26 = vadd.f32 %v2076_v42, %v1886_v37  ;;  %v1225_v29 = vpop.f32.mrb[1].mxu0  ;;  %v2389_v47 = vadd.f32 %v2388_v43, %v1235_v46 }
 0x182   : > { %1251 = vst [vmem:[%s219_s19 + $0x18] sm:$0xff] %v2387_v36  ;;  %v2385_v48 = vadd.f32 %v1225_v29, %v675_v38  ;;  %v1264_v32 = vmul.f32 %v2387_v36, %v2387_v36 }
 0x183   : > { %1249 = vst [vmem:[%s219_s19 + $0x8] sm:$0xff] %v2384_v26  ;;  %v1262_v49 = vmul.f32 %v2384_v26, %v2384_v26  ;;  %1250 = vst [vmem:[%s219_s19 + $0x10] sm:$0xff] %v2389_v47  ;;  %v1263_v53 = vmul.f32 %v2389_v47, %v2389_v47 }
 0x184   : > { %1248 = vst [vmem:[%s219_s19] sm:$0xff] %v2385_v48  ;;  %v1252_v50 = vadd.f32 %v2385_v48, %v2384_v26  ;;  %v1261_v51 = vmul.f32 %v2385_v48, %v2385_v48 }
 0x186   : > { %v1265_v44 = vadd.f32 %v1262_v49, %v1261_v51  ;;  %v1253_v52 = vadd.f32 %v2389_v47, %v1252_v50 }
 0x188   : > { %v1254_v54 = vadd.f32 %v2387_v36, %v1253_v52  ;;  %v1266_v55 = vadd.f32 %v1265_v44, %v1263_v53 }
 0x18a   : > { %v1255_v14 = vrot.slane %v1254_v54, 4  ;;  %v1267_v56 = vadd.f32 %v1266_v55, %v1264_v32 }
 0x18c   : > { %v1256_v57 = vadd.f32 %v1255_v14, %v1254_v54  ;;  %v1268_v58 = vrot.slane %v1267_v56, 4 }
 0x18e   : > { %v1257_v63 = vrot.slane %v1256_v57, 2  ;;  %v1269_v0 = vadd.f32 %v1268_v58, %v1267_v56 }
 0x190   : > { %v1258_v1 = vadd.f32 %v1257_v63, %v1256_v57  ;;  %v1270_v2 = vrot.slane %v1269_v0, 2 }
 0x192   : > { %v1259_v3 = vrot.slane %v1258_v1, 1  ;;  %v1271_v6 = vadd.f32 %v1270_v2, %v1269_v0 }
 0x194   : > { %v1272_v7 = vrot.slane %v1271_v6, 1  ;;  %v1260_v10 = vadd.f32 %v1259_v3, %v1258_v1 }
 0x196   : > { %v1273_v11 = vadd.f32 %v1272_v7, %v1271_v6 }
 0x198   : > { %v1275_v12 = vsel %vm1274_vm2, %v1260_v10, %v1273_v11 }
 0x199   : > { %1276 = vst [vmem:[%s228_s25] sm:$0x3] %v1275_v12 }
 0x19a PF: > { %s14_s16 = sadd.s32 1, %s2496_s16   ;;  %s3144_s12 = smov %s2488_s14 }
 0x19b   : > { %p11_p8 = scmp.ge.s32.totalorder %s14_s16, 6   ;;  %s3145_s13 = smov %s2492_s15 }
 0x19c   : > { %s3146_s14 = smov %s3149_s17  ;;  %s3147_s15 = smov %s3153_s18 }
 0x19d   :  { %13 = sbr.rel (!%p11_p8) target bundleno = 3 (0x3), region = 78 }

</bundles_post_ra>
